<compile_context>
chip_gen: v7x
topology: tpu7x:2x2x1
jax: 0.10.0
libtpu: 0.0.40
codegen_flags: <defaults>
</compile_context>

<pallas_src>
import jax
import jax.numpy as jnp
import numpy as np
from jax.experimental import pallas as pl
from jax.experimental.pallas import tpu as pltpu


# Fixed geometry implied by the module: 13x13 input -> conv3 output is 4x4,
# matching dense1's 16*4*4 fan-in.
_H = 13
_IN_FEATS = _H * _H      # 169
_P1 = 512                # 4*11*11 = 484, padded to a lane multiple
_P2 = 768                # 8*9*9  = 648, padded to a lane multiple
_P3 = 256                # 16*4*4 = 256, already lane aligned


def _round_up(a, m):
    return (a + m - 1) // m * m


# ----------------------------------------------------------------------------
# Kernel: whole forward pass for one batch tile, six MXU matmuls, all in VMEM.
# ----------------------------------------------------------------------------
def _qnet_kernel(x_ref, m1_ref, v1_ref, m2_ref, v2_ref, m3_ref, v3_ref,
                 w1_ref, b1_ref, w2_ref, b2_ref, w3_ref, b3_ref, o_ref):
    f32 = jnp.float32
    a = x_ref[...]                                                    # (BT, 169)
    # conv1 + folded bn1 + relu
    a = jnp.maximum(jnp.dot(a, m1_ref[...], preferred_element_type=f32)
                    + v1_ref[...], 0.0)                               # (BT, 512)
    # conv2 + folded bn2 + relu
    a = jnp.maximum(jnp.dot(a, m2_ref[...], preferred_element_type=f32)
                    + v2_ref[...], 0.0)                               # (BT, 768)
    # conv3 (stride 2, only the 16 valid positions) + folded bn3 + relu;
    # column layout already equals PyTorch's NCHW flatten of (16, 4, 4).
    a = jnp.maximum(jnp.dot(a, m3_ref[...], preferred_element_type=f32)
                    + v3_ref[...], 0.0)                               # (BT, 256)
    # dense1 -> dense2 -> dense3 (no activations, per the PyTorch module)
    a = jnp.dot(a, w1_ref[...], preferred_element_type=f32) + b1_ref[...]  # (BT, 64)
    a = jnp.dot(a, w2_ref[...], preferred_element_type=f32) + b2_ref[...]  # (BT, 16)
    a = jnp.dot(a, w3_ref[...], preferred_element_type=f32) + b3_ref[...]  # (BT, 4)
    o_ref[...] = a.astype(o_ref.dtype)


# ----------------------------------------------------------------------------
# One fused, batch-tiled pallas_call for the whole network
# ----------------------------------------------------------------------------
def qnet_forward(kp, x, b_tile=256):
    n = x.shape[0]
    assert x.shape[1:] == (1, _H, _H), x.shape
    x2d = x.reshape(n, _IN_FEATS).astype(jnp.float32)

    # Batch tile: multiple of 8 (sublane rule); cap it so the grid has >= 2
    # steps whenever the batch allows it (lets v7x's two cores split the work).
    bt = max(8, min(int(b_tile), _round_up((n + 1) // 2, 8)))
    n_pad = _round_up(n, bt)
    if n_pad != n:
        x2d = jnp.pad(x2d, ((0, n_pad - n), (0, 0)))

    def _fixed(i):
        return (0, 0)

    in_specs = [
        pl.BlockSpec((bt, _IN_FEATS), lambda i: (i, 0)),   # per-tile input
        pl.BlockSpec(kp["m1"].shape, _fixed),              # conv1+bn1 matrix
        pl.BlockSpec(kp["v1"].shape, _fixed),              # conv1+bn1 shift
        pl.BlockSpec(kp["m2"].shape, _fixed),              # conv2+bn2 matrix
        pl.BlockSpec(kp["v2"].shape, _fixed),              # conv2+bn2 shift
        pl.BlockSpec(kp["m3"].shape, _fixed),              # conv3+bn3 matrix
        pl.BlockSpec(kp["v3"].shape, _fixed),              # conv3+bn3 shift
        pl.BlockSpec(kp["w1"].shape, _fixed),              # dense1 w.T (256,64)
        pl.BlockSpec(kp["b1"].shape, _fixed),              # dense1 b
        pl.BlockSpec(kp["w2"].shape, _fixed),              # dense2 w.T
        pl.BlockSpec(kp["b2"].shape, _fixed),              # dense2 b
        pl.BlockSpec(kp["w3"].shape, _fixed),              # dense3 w.T
        pl.BlockSpec(kp["b3"].shape, _fixed),              # dense3 b
    ]

    out = pl.pallas_call(
        _qnet_kernel,
        out_shape=jax.ShapeDtypeStruct((n_pad, 4), jnp.float32),
        grid=(n_pad // bt,),
        in_specs=in_specs,
        out_specs=pl.BlockSpec((bt, 4), lambda i: (i, 0)),
        compiler_params=pltpu.CompilerParams(
            dimension_semantics=("parallel",)),     # batch tiles across cores
    )(x2d, kp["m1"], kp["v1"], kp["m2"], kp["v2"], kp["m3"], kp["v3"],
      kp["w1"], kp["b1"], kp["w2"], kp["b2"], kp["w3"], kp["b3"])
    return out[:n]


# ----------------------------------------------------------------------------
# One-time host-side parameter preparation: lower each 3x3 conv to a dense
# matrix in NCHW-flattened coordinates, fold BatchNorm (eval mode), and
# lane-align the hidden widths with exact zero padding.
# ----------------------------------------------------------------------------
def _conv_as_matrix(w, hi, wi, stride):
    """M (Cin*hi*wi, Cout*ho*wo) so that conv(x).flatten_NCHW == x_flat @ M."""
    cout, cin, kh, kw = w.shape
    ho = (hi - kh) // stride + 1
    wo = (wi - kw) // stride + 1
    m = np.zeros((cin * hi * wi, cout * ho * wo), np.float32)
    cin_idx = np.arange(cin)
    cout_idx = np.arange(cout)
    for ky in range(kh):
        for kx in range(kw):
            wk = w[:, :, ky, kx].T.astype(np.float32)          # (Cin, Cout)
            for oy in range(ho):
                for ox in range(wo):
                    iy = oy * stride + ky
                    ix = ox * stride + kx
                    rows = cin_idx * (hi * wi) + iy * wi + ix
                    cols = cout_idx * (ho * wo) + oy * wo + ox
                    m[np.ix_(rows, cols)] = wk
    return m, ho, wo


def _fold_bn(m, conv_b, gamma, beta, mean, var, hw, eps):
    scale = gamma / np.sqrt(var + eps)                         # (Cout,)
    shift = (conv_b - mean) * scale + beta                     # (Cout,)
    m = m * np.repeat(scale, hw)[None, :]
    v = np.repeat(shift, hw)[None, :].astype(np.float32)       # (1, Cout*hw)
    return m.astype(np.float32), v


def _pad_cols(m, v, width):
    mp = np.zeros((m.shape[0], width), np.float32)
    mp[:, :m.shape[1]] = m
    vp = np.zeros((1, width), np.float32)
    vp[:, :v.shape[1]] = v
    return mp, vp


def _pad_rows(m, rows):
    mp = np.zeros((rows, m.shape[1]), np.float32)
    mp[:m.shape[0]] = m
    return mp


def prepare_qnet_params(p, eps=1e-5):
    g = {k: np.asarray(v, np.float32) for k, v in p.items()}

    m1, ho1, wo1 = _conv_as_matrix(g["conv1_w"], _H, _H, 1)        # (169, 484)
    m1, v1 = _fold_bn(m1, g["conv1_b"], g["bn1_gamma"], g["bn1_beta"],
                      g["bn1_mean"], g["bn1_var"], ho1 * wo1, eps)
    m2, ho2, wo2 = _conv_as_matrix(g["conv2_w"], ho1, wo1, 1)      # (484, 648)
    m2, v2 = _fold_bn(m2, g["conv2_b"], g["bn2_gamma"], g["bn2_beta"],
                      g["bn2_mean"], g["bn2_var"], ho2 * wo2, eps)
    m3, ho3, wo3 = _conv_as_matrix(g["conv3_w"], ho2, wo2, 2)      # (648, 256)
    m3, v3 = _fold_bn(m3, g["conv3_b"], g["bn3_gamma"], g["bn3_beta"],
                      g["bn3_mean"], g["bn3_var"], ho3 * wo3, eps)
    assert 16 * ho3 * wo3 == g["dense1_w"].shape[1]                # 256

    # Lane-align hidden widths.  Padded activation columns are exactly zero
    # (zero matrix columns + zero bias + relu(0)=0) and multiply zero rows of
    # the next matrix, so numerics are unchanged.
    m1p, v1p = _pad_cols(m1, v1, _P1)
    m2p, v2p = _pad_cols(m2, v2, _P2)
    m2p = _pad_rows(m2p, _P1)
    m3p, v3p = _pad_cols(m3, v3, _P3)
    m3p = _pad_rows(m3p, _P2)

    jf = lambda a: jnp.asarray(a, jnp.float32)
    return {
        "m1": jf(m1p), "v1": jf(v1p),
        "m2": jf(m2p), "v2": jf(v2p),
        "m3": jf(m3p), "v3": jf(v3p),
        "w1": jf(g["dense1_w"].T), "b1": jf(g["dense1_b"].reshape(1, -1)),
        "w2": jf(g["dense2_w"].T), "b2": jf(g["dense2_b"].reshape(1, -1)),
        "w3": jf(g["dense3_w"].T), "b3": jf(g["dense3_b"].reshape(1, -1)),
    }


# ----------------------------------------------------------------------------
# Pure-JAX reference (same math as the PyTorch module, eval-mode BN)
# ----------------------------------------------------------------------------
def qnet_reference(p, x, eps=1e-5):
    def conv_bn_relu(a, w, b, gamma, beta, mean, var, stride):
        a = jax.lax.conv_general_dilated(
            a, w, window_strides=(stride, stride), padding="VALID",
            dimension_numbers=("NCHW", "OIHW", "NCHW"))
        a = a + b.reshape(1, -1, 1, 1)
        scale = (gamma / jnp.sqrt(var + eps)).reshape(1, -1, 1, 1)
        a = scale * (a - mean.reshape(1, -1, 1, 1)) + beta.reshape(1, -1, 1, 1)
        return jnp.maximum(a, 0.0)

    a = conv_bn_relu(x, p["conv1_w"], p["conv1_b"], p["bn1_gamma"],
                     p["bn1_beta"], p["bn1_mean"], p["bn1_var"], 1)
    a = conv_bn_relu(a, p["conv2_w"], p["conv2_b"], p["bn2_gamma"],
                     p["bn2_beta"], p["bn2_mean"], p["bn2_var"], 1)
    a = conv_bn_relu(a, p["conv3_w"], p["conv3_b"], p["bn3_gamma"],
                     p["bn3_beta"], p["bn3_mean"], p["bn3_var"], 2)
    a = a.reshape(a.shape[0], -1)
    a = a @ p["dense1_w"].T + p["dense1_b"]
    a = a @ p["dense2_w"].T + p["dense2_b"]
    return a @ p["dense3_w"].T + p["dense3_b"]


# ----------------------------------------------------------------------------
# Deterministic parameter construction (shapes from QNet.__init__)
# ----------------------------------------------------------------------------
def init_params(key):
    ks = jax.random.split(key, 12)

    def rnd(k, shape, s=0.1):
        return (s * jax.random.normal(k, shape)).astype(jnp.float32)

    params = {
        "conv1_w": rnd(ks[0], (4, 1, 3, 3)),   "conv1_b": rnd(ks[1], (4,)),
        "conv2_w": rnd(ks[2], (8, 4, 3, 3)),   "conv2_b": rnd(ks[3], (8,)),
        "conv3_w": rnd(ks[4], (16, 8, 3, 3)),  "conv3_b": rnd(ks[5], (16,)),
        "dense1_w": rnd(ks[6], (64, 16 * 4 * 4)), "dense1_b": rnd(ks[7], (64,)),
        "dense2_w": rnd(ks[8], (16, 64)),          "dense2_b": rnd(ks[9], (16,)),
        "dense3_w": rnd(ks[10], (4, 16)),          "dense3_b": rnd(ks[11], (4,)),
    }
    for name, c, kk in (("bn1", 4, 0), ("bn2", 8, 1), ("bn3", 16, 2)):
        sub = jax.random.split(jax.random.fold_in(key, 100 + kk), 4)
        params[f"{name}_gamma"] = (1.0 + 0.1 * jax.random.normal(sub[0], (c,))).astype(jnp.float32)
        params[f"{name}_beta"] = (0.1 * jax.random.normal(sub[1], (c,))).astype(jnp.float32)
        params[f"{name}_mean"] = (0.1 * jax.random.normal(sub[2], (c,))).astype(jnp.float32)
        params[f"{name}_var"] = (1.0 + 0.5 * jax.random.uniform(sub[3], (c,))).astype(jnp.float32)
    return params


if __name__ == "__main__":
    key = jax.random.PRNGKey(0)
    pkey, xkey = jax.random.split(key)
    params = init_params(pkey)
    kparams = prepare_qnet_params(params)      # one-time weight repack / BN fold

    # 13x13 input so that conv3's output is 4x4 (matches dense1 = 16*4*4).
    x = jax.random.normal(xkey, (2, 1, 13, 13), dtype=jnp.float32)

    out = jax.jit(qnet_forward)(kparams, x)
    out = jax.block_until_ready(out)
    assert out.shape == (2, 4), out.shape
    assert bool(jnp.all(jnp.isfinite(out)))

    ref = jax.block_until_ready(qnet_reference(params, x))
    err = float(jnp.max(jnp.abs(out - ref)))
    assert err < 5e-2, f"max abs error vs reference: {err}"
    print("KERNEL_OK")
</pallas_src>

<mosaic_0001>
module attributes {stable_mosaic.version = 11 : i64} {
  func.func @_qnet_kernel(%arg0: i32, %arg1: memref<8x169xf32, #tpu.memory_space<vmem>>, %arg2: memref<169x512xf32, #tpu.memory_space<vmem>>, %arg3: memref<1x512xf32, #tpu.memory_space<vmem>>, %arg4: memref<512x768xf32, #tpu.memory_space<vmem>>, %arg5: memref<1x768xf32, #tpu.memory_space<vmem>>, %arg6: memref<768x256xf32, #tpu.memory_space<vmem>>, %arg7: memref<1x256xf32, #tpu.memory_space<vmem>>, %arg8: memref<256x64xf32, #tpu.memory_space<vmem>>, %arg9: memref<1x64xf32, #tpu.memory_space<vmem>>, %arg10: memref<64x16xf32, #tpu.memory_space<vmem>>, %arg11: memref<1x16xf32, #tpu.memory_space<vmem>>, %arg12: memref<16x4xf32, #tpu.memory_space<vmem>>, %arg13: memref<1x4xf32, #tpu.memory_space<vmem>>, %arg14: memref<8x4xf32, #tpu.memory_space<vmem>>) attributes {dimension_semantics = [#tpu.dimension_semantics<parallel>], iteration_bounds = array<i64: 1>, scalar_prefetch = 0 : i64, scratch_operands = 0 : i64, tpu.core_type = #tpu.core_type<tc>, window_params = [{transform_indices = @transform_0, window_bounds = array<i64: 8, 169>}, {pipeline_mode = #tpu.pipeline_mode<synchronous>, transform_indices = @transform_1, window_bounds = array<i64: 169, 512>}, {pipeline_mode = #tpu.pipeline_mode<synchronous>, transform_indices = @transform_2, window_bounds = array<i64: 1, 512>}, {pipeline_mode = #tpu.pipeline_mode<synchronous>, transform_indices = @transform_3, window_bounds = array<i64: 512, 768>}, {pipeline_mode = #tpu.pipeline_mode<synchronous>, transform_indices = @transform_4, window_bounds = array<i64: 1, 768>}, {pipeline_mode = #tpu.pipeline_mode<synchronous>, transform_indices = @transform_5, window_bounds = array<i64: 768, 256>}, {pipeline_mode = #tpu.pipeline_mode<synchronous>, transform_indices = @transform_6, window_bounds = array<i64: 1, 256>}, {pipeline_mode = #tpu.pipeline_mode<synchronous>, transform_indices = @transform_7, window_bounds = array<i64: 256, 64>}, {pipeline_mode = #tpu.pipeline_mode<synchronous>, transform_indices = @transform_8, window_bounds = array<i64: 1, 64>}, {pipeline_mode = #tpu.pipeline_mode<synchronous>, transform_indices = @transform_9, window_bounds = array<i64: 64, 16>}, {pipeline_mode = #tpu.pipeline_mode<synchronous>, transform_indices = @transform_10, window_bounds = array<i64: 1, 16>}, {pipeline_mode = #tpu.pipeline_mode<synchronous>, transform_indices = @transform_11, window_bounds = array<i64: 16, 4>}, {pipeline_mode = #tpu.pipeline_mode<synchronous>, transform_indices = @transform_12, window_bounds = array<i64: 1, 4>}, {transform_indices = @transform_13, window_bounds = array<i64: 8, 4>}]} {
    %c0 = arith.constant 0 : index
    %c0_0 = arith.constant 0 : index
    %0 = vector.load %arg1[%c0, %c0_0] : memref<8x169xf32, #tpu.memory_space<vmem>>, vector<8x169xf32>
    %c0_1 = arith.constant 0 : index
    %c0_2 = arith.constant 0 : index
    %1 = vector.load %arg2[%c0_1, %c0_2] : memref<169x512xf32, #tpu.memory_space<vmem>>, vector<169x512xf32>
    %cst = arith.constant dense<0.000000e+00> : vector<8x512xf32>
    %2 = tpu.matmul %0, %1, %cst {dimension_numbers = #tpu.dot_dimension_numbers<[1], [0], [0], [1], [0, 0, 1, 1], [], []>} : vector<8x169xf32>, vector<169x512xf32>, vector<8x512xf32> -> vector<8x512xf32>
    %c0_3 = arith.constant 0 : index
    %c0_4 = arith.constant 0 : index
    %3 = vector.load %arg3[%c0_3, %c0_4] : memref<1x512xf32, #tpu.memory_space<vmem>>, vector<1x512xf32>
    %4 = vector.broadcast %3 : vector<1x512xf32> to vector<8x512xf32>
    %5 = arith.addf %2, %4 : vector<8x512xf32>
    %cst_5 = arith.constant 0.000000e+00 : f32
    %6 = vector.broadcast %cst_5 : f32 to vector<8x512xf32>
    %7 = arith.maximumf %5, %6 : vector<8x512xf32>
    %c0_6 = arith.constant 0 : index
    %c0_7 = arith.constant 0 : index
    %8 = vector.load %arg4[%c0_6, %c0_7] : memref<512x768xf32, #tpu.memory_space<vmem>>, vector<512x768xf32>
    %cst_8 = arith.constant dense<0.000000e+00> : vector<8x768xf32>
    %9 = tpu.matmul %7, %8, %cst_8 {dimension_numbers = #tpu.dot_dimension_numbers<[1], [0], [0], [1], [0, 0, 1, 1], [], []>} : vector<8x512xf32>, vector<512x768xf32>, vector<8x768xf32> -> vector<8x768xf32>
    %c0_9 = arith.constant 0 : index
    %c0_10 = arith.constant 0 : index
    %10 = vector.load %arg5[%c0_9, %c0_10] : memref<1x768xf32, #tpu.memory_space<vmem>>, vector<1x768xf32>
    %11 = vector.broadcast %10 : vector<1x768xf32> to vector<8x768xf32>
    %12 = arith.addf %9, %11 : vector<8x768xf32>
    %cst_11 = arith.constant 0.000000e+00 : f32
    %13 = vector.broadcast %cst_11 : f32 to vector<8x768xf32>
    %14 = arith.maximumf %12, %13 : vector<8x768xf32>
    %c0_12 = arith.constant 0 : index
    %c0_13 = arith.constant 0 : index
    %15 = vector.load %arg6[%c0_12, %c0_13] : memref<768x256xf32, #tpu.memory_space<vmem>>, vector<768x256xf32>
    %cst_14 = arith.constant dense<0.000000e+00> : vector<8x256xf32>
    %16 = tpu.matmul %14, %15, %cst_14 {dimension_numbers = #tpu.dot_dimension_numbers<[1], [0], [0], [1], [0, 0, 1, 1], [], []>} : vector<8x768xf32>, vector<768x256xf32>, vector<8x256xf32> -> vector<8x256xf32>
    %c0_15 = arith.constant 0 : index
    %c0_16 = arith.constant 0 : index
    %17 = vector.load %arg7[%c0_15, %c0_16] : memref<1x256xf32, #tpu.memory_space<vmem>>, vector<1x256xf32>
    %18 = vector.broadcast %17 : vector<1x256xf32> to vector<8x256xf32>
    %19 = arith.addf %16, %18 : vector<8x256xf32>
    %cst_17 = arith.constant 0.000000e+00 : f32
    %20 = vector.broadcast %cst_17 : f32 to vector<8x256xf32>
    %21 = arith.maximumf %19, %20 : vector<8x256xf32>
    %c0_18 = arith.constant 0 : index
    %c0_19 = arith.constant 0 : index
    %22 = vector.load %arg8[%c0_18, %c0_19] : memref<256x64xf32, #tpu.memory_space<vmem>>, vector<256x64xf32>
    %cst_20 = arith.constant dense<0.000000e+00> : vector<8x64xf32>
    %23 = tpu.matmul %21, %22, %cst_20 {dimension_numbers = #tpu.dot_dimension_numbers<[1], [0], [0], [1], [0, 0, 1, 1], [], []>} : vector<8x256xf32>, vector<256x64xf32>, vector<8x64xf32> -> vector<8x64xf32>
    %c0_21 = arith.constant 0 : index
    %c0_22 = arith.constant 0 : index
    %24 = vector.load %arg9[%c0_21, %c0_22] : memref<1x64xf32, #tpu.memory_space<vmem>>, vector<1x64xf32>
    %25 = vector.broadcast %24 : vector<1x64xf32> to vector<8x64xf32>
    %26 = arith.addf %23, %25 : vector<8x64xf32>
    %c0_23 = arith.constant 0 : index
    %c0_24 = arith.constant 0 : index
    %27 = vector.load %arg10[%c0_23, %c0_24] : memref<64x16xf32, #tpu.memory_space<vmem>>, vector<64x16xf32>
    %cst_25 = arith.constant dense<0.000000e+00> : vector<8x16xf32>
    %28 = tpu.matmul %26, %27, %cst_25 {dimension_numbers = #tpu.dot_dimension_numbers<[1], [0], [0], [1], [0, 0, 1, 1], [], []>} : vector<8x64xf32>, vector<64x16xf32>, vector<8x16xf32> -> vector<8x16xf32>
    %c0_26 = arith.constant 0 : index
    %c0_27 = arith.constant 0 : index
    %29 = vector.load %arg11[%c0_26, %c0_27] : memref<1x16xf32, #tpu.memory_space<vmem>>, vector<1x16xf32>
    %30 = vector.broadcast %29 : vector<1x16xf32> to vector<8x16xf32>
    %31 = arith.addf %28, %30 : vector<8x16xf32>
    %c0_28 = arith.constant 0 : index
    %c0_29 = arith.constant 0 : index
    %32 = vector.load %arg12[%c0_28, %c0_29] : memref<16x4xf32, #tpu.memory_space<vmem>>, vector<16x4xf32>
    %cst_30 = arith.constant dense<0.000000e+00> : vector<8x4xf32>
    %33 = tpu.matmul %31, %32, %cst_30 {dimension_numbers = #tpu.dot_dimension_numbers<[1], [0], [0], [1], [0, 0, 1, 1], [], []>} : vector<8x16xf32>, vector<16x4xf32>, vector<8x4xf32> -> vector<8x4xf32>
    %c0_31 = arith.constant 0 : index
    %c0_32 = arith.constant 0 : index
    %34 = vector.load %arg13[%c0_31, %c0_32] : memref<1x4xf32, #tpu.memory_space<vmem>>, vector<1x4xf32>
    %35 = vector.broadcast %34 : vector<1x4xf32> to vector<8x4xf32>
    %36 = arith.addf %33, %35 : vector<8x4xf32>
    %c0_33 = arith.constant 0 : index
    %c0_34 = arith.constant 0 : index
    %37 = vector.load %arg14[%c0_33, %c0_34] : memref<8x4xf32, #tpu.memory_space<vmem>>, vector<8x4xf32>
    tpu.vector_store %arg14[%c0_33, %c0_34], %36 {strides = array<i32>} : memref<8x4xf32, #tpu.memory_space<vmem>>, vector<8x4xf32>,
    return
  }
  func.func @transform_0(%arg0: i32) -> (i32, i32) {
    %c0_i32 = arith.constant 0 : i32
    %c0_i32_0 = arith.constant 0 : i32
    return %arg0, %c0_i32 : i32, i32
  }
  func.func @transform_1(%arg0: i32) -> (i32, i32) {
    %c0_i32 = arith.constant 0 : i32
    %c0_i32_0 = arith.constant 0 : i32
    %c0_i32_1 = arith.constant 0 : i32
    return %c0_i32, %c0_i32_0 : i32, i32
  }
  func.func @transform_2(%arg0: i32) -> (i32, i32) {
    %c0_i32 = arith.constant 0 : i32
    %c0_i32_0 = arith.constant 0 : i32
    %c0_i32_1 = arith.constant 0 : i32
    return %c0_i32, %c0_i32_0 : i32, i32
  }
  func.func @transform_3(%arg0: i32) -> (i32, i32) {
    %c0_i32 = arith.constant 0 : i32
    %c0_i32_0 = arith.constant 0 : i32
    %c0_i32_1 = arith.constant 0 : i32
    return %c0_i32, %c0_i32_0 : i32, i32
  }
  func.func @transform_4(%arg0: i32) -> (i32, i32) {
    %c0_i32 = arith.constant 0 : i32
    %c0_i32_0 = arith.constant 0 : i32
    %c0_i32_1 = arith.constant 0 : i32
    return %c0_i32, %c0_i32_0 : i32, i32
  }
  func.func @transform_5(%arg0: i32) -> (i32, i32) {
    %c0_i32 = arith.constant 0 : i32
    %c0_i32_0 = arith.constant 0 : i32
    %c0_i32_1 = arith.constant 0 : i32
    return %c0_i32, %c0_i32_0 : i32, i32
  }
  func.func @transform_6(%arg0: i32) -> (i32, i32) {
    %c0_i32 = arith.constant 0 : i32
    %c0_i32_0 = arith.constant 0 : i32
    %c0_i32_1 = arith.constant 0 : i32
    return %c0_i32, %c0_i32_0 : i32, i32
  }
  func.func @transform_7(%arg0: i32) -> (i32, i32) {
    %c0_i32 = arith.constant 0 : i32
    %c0_i32_0 = arith.constant 0 : i32
    %c0_i32_1 = arith.constant 0 : i32
    return %c0_i32, %c0_i32_0 : i32, i32
  }
  func.func @transform_8(%arg0: i32) -> (i32, i32) {
    %c0_i32 = arith.constant 0 : i32
    %c0_i32_0 = arith.constant 0 : i32
    %c0_i32_1 = arith.constant 0 : i32
    return %c0_i32, %c0_i32_0 : i32, i32
  }
  func.func @transform_9(%arg0: i32) -> (i32, i32) {
    %c0_i32 = arith.constant 0 : i32
    %c0_i32_0 = arith.constant 0 : i32
    %c0_i32_1 = arith.constant 0 : i32
    return %c0_i32, %c0_i32_0 : i32, i32
  }
  func.func @transform_10(%arg0: i32) -> (i32, i32) {
    %c0_i32 = arith.constant 0 : i32
    %c0_i32_0 = arith.constant 0 : i32
    %c0_i32_1 = arith.constant 0 : i32
    return %c0_i32, %c0_i32_0 : i32, i32
  }
  func.func @transform_11(%arg0: i32) -> (i32, i32) {
    %c0_i32 = arith.constant 0 : i32
    %c0_i32_0 = arith.constant 0 : i32
    %c0_i32_1 = arith.constant 0 : i32
    return %c0_i32, %c0_i32_0 : i32, i32
  }
  func.func @transform_12(%arg0: i32) -> (i32, i32) {
    %c0_i32 = arith.constant 0 : i32
    %c0_i32_0 = arith.constant 0 : i32
    %c0_i32_1 = arith.constant 0 : i32
    return %c0_i32, %c0_i32_0 : i32, i32
  }
  func.func @transform_13(%arg0: i32) -> (i32, i32) {
    %c0_i32 = arith.constant 0 : i32
    %c0_i32_0 = arith.constant 0 : i32
    return %arg0, %c0_i32 : i32, i32
  }
}

</mosaic_0001>

<bundles_post_ra>
// kernel: qnet_forward.1
= control target key start
LH: loop header
LB: loop body
LE: loop exit
PB: predicated region body
PF: predicated region fallthrough
CT: control target
= control target key end

     0   :  { %18 = vsyncpa [#allocation3], 0  ;;  %s3447_s0 = inlined_call_operand.vmem [shape: f32[8,169], index: 0, kind: input, shape index: {}]   ;;  %s3448_s1 = inlined_call_operand.hbm [shape: f32[169,512], index: 1, kind: input, shape index: {}]   ;;  %s3449_s2 = inlined_call_operand.hbm [shape: f32[1,512], index: 2, kind: input, shape index: {}]   ;;  %s3450_s3 = inlined_call_operand.hbm [shape: f32[512,768], index: 3, kind: input, shape index: {}]   ;;  %s3451_s4 = inlined_call_operand.hbm [shape: f32[1,768], index: 4, kind: input, shape index: {}]   ;;  %s3452_s5 = inlined_call_operand.hbm [shape: f32[768,256], index: 5, kind: input, shape index: {}]   ;;  %s3453_s6 = inlined_call_operand.hbm [shape: f32[1,256], index: 6, kind: input, shape index: {}]   ;;  %s3454_s7 = inlined_call_operand.vmem [shape: f32[256,64], index: 7, kind: input, shape index: {}]   ;;  %s3455_s8 = inlined_call_operand.hbm [shape: f32[1,64], index: 8, kind: input, shape index: {}]   ;;  %s3456_s9 = inlined_call_operand.vmem [shape: f32[64,16], index: 9, kind: input, shape index: {}]   ;;  %s3457_s10 = inlined_call_operand.hbm [shape: f32[1,16], index: 10, kind: input, shape index: {}]   ;;  %s3458_s11 = inlined_call_operand.vmem [shape: f32[16,4], index: 11, kind: input, shape index: {}]   ;;  %s3459_s12 = inlined_call_operand.hbm [shape: f32[1,4], index: 12, kind: input, shape index: {}]   ;;  %s3460_s13 = inlined_call_operand.vmem [shape: f32[8,4], index: 13, kind: output, shape index: {}]  }
   0x1   :  { %19 = vsyncpa [#allocation5], 0 }
   0x2   :  { %20 = vsyncpa [#allocation8], 0 }
   0x3   :  { %21 = vsyncpa [#allocation11], 0 }
   0x4   :  { %22 = vsyncpa [#allocation14], 0  ;;  %s3032_s25 = smov [#allocation4]   ;;  %s3033_s27 = smov [#allocation7]  }
   0x5   :  { %s43_s26 = sshll.u32 %s3032_s25, 4  ;;  %s65_s28 = sshll.u32 %s3033_s27, 4  ;;  %s44_s26 = int_to_ptr.vmem [resolvable:$true] %s43_s26  ;;  %s66_s28 = int_to_ptr.vmem [resolvable:$true] %s65_s28 }
   0x6   :  { %s2824_s14 = scalar_lea.hbm %s3449_s2, 64 }
   0x7   :  { %p2825_p0 = scmp.ne.s32.totalorder %s3449_s2, %s2824_s14  ;;  %p2828_p1 = scmp.lt.u32.totalorder %s2824_s14, %s3449_s2 }
   0x9   :  { %p2830_p2 = pnand %p2828_p1, %p2825_p0 }
   0xb   :  { %2833 = shalt.err (!%p2830_p2)
}
   0xc   :  { %s2834_s19 = scalar_lea.vmem %s44_s26, 64  ;;  %p2839_p4 = scmp.lt.s32.totalorder %s44_s26, %s44_s26 }
   0xd   :  { %p2835_p3 = scmp.ne.s32.totalorder %s44_s26, %s2834_s19  ;;  %p2840_p5 = scmp.lt.s32.totalorder %s2834_s19, %s2834_s19 }
   0xf   :  { %p2841_p6 = por %p2840_p5, %p2839_p4 }
  0x11   :  { %p2842_p7 = pnand %p2841_p6, %p2835_p3 }
  0x13   :  { %2845 = shalt.err (!%p2842_p7)
}
  0x14   :  { %46 = dma.hbm_to_vmem [thread:$0]  %s3449_s2, 64, %s44_s26, [#allocation5]  }
  0x15   :  { %s2846_s24 = scalar_lea.hbm %s3451_s4, 96 }
  0x16   :  { %p2847_p8 = scmp.ne.s32.totalorder %s3451_s4, %s2846_s24  ;;  %p2850_p9 = scmp.lt.u32.totalorder %s2846_s24, %s3451_s4 }
  0x18   :  { %p2852_p10 = pnand %p2850_p9, %p2847_p8 }
  0x1a   :  { %2855 = shalt.err (!%p2852_p10)
}
  0x1b   :  { %s2856_s14 = scalar_lea.vmem %s66_s28, 96  ;;  %p2861_p12 = scmp.lt.s32.totalorder %s66_s28, %s66_s28 }
  0x1c   :  { %p2857_p11 = scmp.ne.s32.totalorder %s66_s28, %s2856_s14  ;;  %p2862_p13 = scmp.lt.s32.totalorder %s2856_s14, %s2856_s14 }
  0x1e   :  { %p2863_p0 = por %p2862_p13, %p2861_p12 }
  0x20   :  { %p2864_p1 = pnand %p2863_p0, %p2857_p11 }
  0x22   :  { %2867 = shalt.err (!%p2864_p1)
}
  0x23   :  { %68 = dma.hbm_to_vmem [thread:$0]  %s3451_s4, 96, %s66_s28, [#allocation8]  }
  0x24   :  { %s3034_s15 = smov [#allocation10]   ;;  %s3035_s17 = smov [#allocation13]  }
  0x25   :  { %s87_s16 = sshll.u32 %s3034_s15, 4  ;;  %s111_s18 = sshll.u32 %s3035_s17, 4  ;;  %s88_s16 = int_to_ptr.vmem [resolvable:$true] %s87_s16  ;;  %s112_s18 = int_to_ptr.vmem [resolvable:$true] %s111_s18 }
  0x26   :  { %s2868_s21 = scalar_lea.hbm %s3453_s6, 32 }
  0x27   :  { %p2869_p2 = scmp.ne.s32.totalorder %s3453_s6, %s2868_s21  ;;  %p2872_p3 = scmp.lt.u32.totalorder %s2868_s21, %s3453_s6 }
  0x29   :  { %p2874_p4 = pnand %p2872_p3, %p2869_p2 }
  0x2b   :  { %2877 = shalt.err (!%p2874_p4)
}
  0x2c   :  { %s2878_s4 = scalar_lea.vmem %s88_s16, 32  ;;  %p2883_p6 = scmp.lt.s32.totalorder %s88_s16, %s88_s16 }
  0x2d   :  { %p2879_p5 = scmp.ne.s32.totalorder %s88_s16, %s2878_s4  ;;  %p2884_p7 = scmp.lt.s32.totalorder %s2878_s4, %s2878_s4 }
  0x2f   :  { %p2885_p8 = por %p2884_p7, %p2883_p6 }
  0x31   :  { %p2886_p9 = pnand %p2885_p8, %p2879_p5 }
  0x33   :  { %2889 = shalt.err (!%p2886_p9)
}
  0x34   :  { %90 = dma.hbm_to_vmem [thread:$0]  %s3453_s6, 32, %s88_s16, [#allocation11]  }
  0x35   :  { %s2890_s14 = scalar_lea.hbm %s3457_s10, 16 }
  0x36   :  { %p2891_p10 = scmp.ne.s32.totalorder %s3457_s10, %s2890_s14  ;;  %p2894_p11 = scmp.lt.u32.totalorder %s2890_s14, %s3457_s10 }
  0x38   :  { %p2896_p12 = pnand %p2894_p11, %p2891_p10 }
  0x3a   :  { %2899 = shalt.err (!%p2896_p12)
}
  0x3b   :  { %s2900_s19 = scalar_lea.vmem %s112_s18, 16  ;;  %s2904_s20 = scalar_lea.vmem %s112_s18, 32 }
  0x3c   :  { %p2901_p13 = scmp.ne.s32.totalorder %s112_s18, %s2900_s19  ;;  %p2905_p0 = scmp.lt.s32.totalorder %s112_s18, %s112_s18 }
  0x3d   :  { %p2906_p1 = scmp.lt.s32.totalorder %s2904_s20, %s2900_s19 }
  0x3f   :  { %p2907_p2 = por %p2906_p1, %p2905_p0 }
  0x41   :  { %p2908_p3 = pnand %p2907_p2, %p2901_p13 }
  0x43   :  { %2911 = shalt.err (!%p2908_p3)
}
  0x44   :  { %114 = dma.hbm_to_vmem [thread:$0]  %s3457_s10, 16, %s112_s18, [#allocation14]  }
  0x45   :  { %s3036_s21 = smov [#allocation2]   ;;  %s2912_s25 = scalar_lea.hbm %s3448_s1, 11264 }
  0x46   :  { %s30_s22 = sshll.u32 %s3036_s21, 4  ;;  %p2913_p4 = scmp.ne.s32.totalorder %s3448_s1, %s2912_s25  ;;  %s31_s22 = int_to_ptr.vmem [resolvable:$true] %s30_s22 }
  0x47   :  { %p2916_p5 = scmp.lt.u32.totalorder %s2912_s25, %s3448_s1 }
  0x49   :  { %p2918_p6 = pnand %p2916_p5, %p2913_p4 }
  0x4b   :  { %2921 = shalt.err (!%p2918_p6)
}
  0x4c   :  { %s2922_s30 = scalar_lea.vmem %s31_s22, 11264  ;;  %p2927_p8 = scmp.lt.s32.totalorder %s31_s22, %s31_s22 }
  0x4d   :  { %p2923_p7 = scmp.ne.s32.totalorder %s31_s22, %s2922_s30  ;;  %p2928_p9 = scmp.lt.s32.totalorder %s2922_s30, %s2922_s30 }
  0x4f   :  { %p2929_p10 = por %p2928_p9, %p2927_p8 }
  0x51   :  { %p2930_p11 = pnand %p2929_p10, %p2923_p7 }
  0x53   :  { %2933 = shalt.err (!%p2930_p11)
}
  0x54   :  { %s3037_s10 = smov 512   ;;  %s3038_s18 = smov 32  }
  0x55   :  { %36 = dma.hbm_to_vmem [thread:$0]  %s3448_s1, 11264, %s31_s22, [#allocation3], %s3037_s10, %s3037_s10, %s3038_s18  }
  0x56   :  { %s3039_s26 = smov [#allocation6]   ;;  %s2934_s20 = scalar_lea.hbm %s3450_s3, 49152 }
  0x57   :  { %s52_s15 = sshll.u32 %s3039_s26, 4  ;;  %p2935_p12 = scmp.ne.s32.totalorder %s3450_s3, %s2934_s20  ;;  %s53_s15 = int_to_ptr.vmem [resolvable:$true] %s52_s15 }
  0x58   :  { %p2938_p13 = scmp.lt.u32.totalorder %s2934_s20, %s3450_s3 }
  0x5a   :  { %p2940_p0 = pnand %p2938_p13, %p2935_p12 }
  0x5c   :  { %2943 = shalt.err (!%p2940_p0)
}
  0x5d   :  { %s2944_s24 = scalar_lea.vmem %s53_s15, 49152  ;;  %p2949_p2 = scmp.lt.s32.totalorder %s53_s15, %s53_s15 }
  0x5e   :  { %p2945_p1 = scmp.ne.s32.totalorder %s53_s15, %s2944_s24  ;;  %p2950_p3 = scmp.lt.s32.totalorder %s2944_s24, %s2944_s24 }
  0x60   :  { %p2951_p4 = por %p2950_p3, %p2949_p2 }
  0x62   :  { %p2952_p5 = pnand %p2951_p4, %p2945_p1 }
  0x64   :  { %2955 = shalt.err (!%p2952_p5)
}
  0x65   :  { %s3040_s1 = smov 768   ;;  %s3041_s22 = smov 48  }
  0x66   :  { %58 = dma.hbm_to_vmem [thread:$0]  %s3450_s3, 49152, %s53_s15, [#allocation5], %s3040_s1, %s3040_s1, %s3041_s22  }
  0x67   :  { %s3042_s28 = smov [#allocation9]   ;;  %s2956_s10 = scalar_lea.hbm %s3452_s5, 24576 }
  0x68   :  { %s74_s27 = sshll.u32 %s3042_s28, 4  ;;  %p2957_p6 = scmp.ne.s32.totalorder %s3452_s5, %s2956_s10  ;;  %s75_s27 = int_to_ptr.vmem [resolvable:$true] %s74_s27 }
  0x69   :  { %p2960_p7 = scmp.lt.u32.totalorder %s2956_s10, %s3452_s5 }
  0x6b   :  { %p2962_p8 = pnand %p2960_p7, %p2957_p6 }
  0x6d   :  { %2965 = shalt.err (!%p2962_p8)
}
  0x6e   :  { %s2966_s17 = scalar_lea.vmem %s75_s27, 24576  ;;  %p2971_p10 = scmp.lt.s32.totalorder %s75_s27, %s75_s27 }
  0x6f   :  { %p2967_p9 = scmp.ne.s32.totalorder %s75_s27, %s2966_s17  ;;  %p2972_p11 = scmp.lt.s32.totalorder %s2966_s17, %s2966_s17 }
  0x71   :  { %p2973_p12 = por %p2972_p11, %p2971_p10 }
  0x73   :  { %p2974_p13 = pnand %p2973_p12, %p2967_p9 }
  0x75   :  { %2977 = shalt.err (!%p2974_p13)
}
  0x76   :  { %s3043_s3 = smov 256   ;;  %s3044_s15 = smov 16  }
  0x77   :  { %80 = dma.hbm_to_vmem [thread:$0]  %s3452_s5, 24576, %s75_s27, [#allocation8], %s3043_s3, %s3043_s3, %s3044_s15  }
  0x78   :  { %s3045_s6 = smov [#allocation12]   ;;  %s3046_s21 = smov [#allocation15]  }
  0x79   :  { %s99_s16 = sshll.u32 %s3045_s6, 4  ;;  %s123_s23 = sshll.u32 %s3046_s21, 4  ;;  %s100_s16 = int_to_ptr.vmem [resolvable:$true] %s99_s16  ;;  %s124_s23 = int_to_ptr.vmem [resolvable:$true] %s123_s23 }
  0x7a   :  { %s2978_s22 = scalar_lea.hbm %s3455_s8, 16 }
  0x7b   :  { %p2979_p0 = scmp.ne.s32.totalorder %s3455_s8, %s2978_s22  ;;  %p2982_p1 = scmp.lt.u32.totalorder %s2978_s22, %s3455_s8 }
  0x7d   :  { %p2984_p2 = pnand %p2982_p1, %p2979_p0 }
  0x7f   :  { %2987 = shalt.err (!%p2984_p2)
}
  0x80   :  { %s2988_s5 = scalar_lea.vmem %s100_s16, 16  ;;  %s2992_s27 = scalar_lea.vmem %s100_s16, 32 }
  0x81   :  { %p2989_p3 = scmp.ne.s32.totalorder %s100_s16, %s2988_s5  ;;  %p2993_p4 = scmp.lt.s32.totalorder %s100_s16, %s100_s16 }
  0x82   :  { %p2994_p5 = scmp.lt.s32.totalorder %s2992_s27, %s2988_s5 }
  0x84   :  { %p2995_p6 = por %p2994_p5, %p2993_p4 }
  0x86   :  { %p2996_p7 = pnand %p2995_p6, %p2989_p3 }
  0x88   :  { %2999 = shalt.err (!%p2996_p7)
}
  0x89   :  { %102 = dma.hbm_to_vmem [thread:$0]  %s3455_s8, 16, %s100_s16, [#allocation11]  }
  0x8a   :  { %s3000_s2 = scalar_lea.hbm %s3459_s12, 16 }
  0x8b   :  { %p3001_p8 = scmp.ne.s32.totalorder %s3459_s12, %s3000_s2  ;;  %p3004_p9 = scmp.lt.u32.totalorder %s3000_s2, %s3459_s12 }
  0x8d   :  { %p3006_p10 = pnand %p3004_p9, %p3001_p8 }
  0x8f   :  { %3009 = shalt.err (!%p3006_p10)
}
  0x90   :  { %s3010_s19 = scalar_lea.vmem %s124_s23, 16  ;;  %s3014_s20 = scalar_lea.vmem %s124_s23, 32 }
  0x91   :  { %p3011_p11 = scmp.ne.s32.totalorder %s124_s23, %s3010_s19  ;;  %p3015_p12 = scmp.lt.s32.totalorder %s124_s23, %s124_s23 }
  0x92   :  { %p3016_p13 = scmp.lt.s32.totalorder %s3014_s20, %s3010_s19 }
  0x94   :  { %p3017_p0 = por %p3016_p13, %p3015_p12 }
  0x96   :  { %p3018_p1 = pnand %p3017_p0, %p3011_p11 }
  0x98   :  { %3021 = shalt.err (!%p3018_p1)
}
  0x99   :  { %126 = dma.hbm_to_vmem [thread:$0]  %s3459_s12, 16, %s124_s23, [#allocation14]  }
  0x9a   :  { %3022 = dma.done.wait [#allocation3], 11264  }
  0x9b   :  { %3023 = vsyncadd [#allocation3], 4294956032 }
  0x9c   :  { %3024 = dma.done.wait [#allocation5], 49216  }
  0x9d   :  { %3025 = vsyncadd [#allocation5], 4294918080 }
  0x9e   :  { %3026 = dma.done.wait [#allocation8], 24672  }
  0x9f   :  { %3027 = vsyncadd [#allocation8], 4294942624 }
  0xa0   :  { %3028 = dma.done.wait [#allocation11], 48  }
  0xa1   :  { %3029 = vsyncadd [#allocation11], 4294967248 }
  0xa2   :  { %3030 = dma.done.wait [#allocation14], 32  }
  0xa3   :  { %3031 = vsyncadd [#allocation14], 4294967264  ;;  %v157_v0 = vld [vmem:[#allocation2 + $0x8] sm:$0xff]  ;;  %v156_v2 = vld [vmem:[#allocation2] sm:$0xff]  ;;  %vm266_vm0 = vcmask 334848   ;;  %vm270_vm1 = vcmask 1040384  }
  0xa4   :  { %v161_v1 = vld [vmem:[#allocation2 + $0x28] sm:$0xff]  ;;  %v160_v4 = vld [vmem:[#allocation2 + $0x20] sm:$0xff]  ;;  %v159_v34 = vld [vmem:[#allocation2 + $0x18] sm:$0xff]  ;;  %vm3047_vm2 = vmmov 1   ;;  %vm3049_vm4 = vmmov 0   ;;  %vm1820_vm5 = vcmask 523264  }
  0xa5   :  { %v2072_v3 = vpack.c.bf16 %v161_v1, %v157_v0  ;;  %v165_v5 = vld [vmem:[#allocation2 + $0x48] sm:$0xff]  ;;  %v2074_v7 = vpack.c.bf16 %v160_v4, %v156_v2  ;;  %v164_v9 = vld [vmem:[#allocation2 + $0x40] sm:$0xff]  ;;  %v163_v35 = vld [vmem:[#allocation2 + $0x38] sm:$0xff]  ;;  %vm1903_vm6 = vcmask 130048   ;;  %vm1977_vm7 = vcmask 31744  }
  0xa6   :  { %v169_v6 = vld [vmem:[#allocation2 + $0x68] sm:$0xff]  ;;  %v168_v10 = vld [vmem:[#allocation2 + $0x60] sm:$0xff]  ;;  %v2118_v38 = vpack.c.bf16 %v163_v35, %v159_v34  ;;  %v158_v39 = vld [vmem:[#allocation2 + $0x10] sm:$0xff] }
  0xa7   :  { %v2076_v8 = vpack.c.bf16 %v169_v6, %v165_v5  ;;  %v173_v11 = vld [vmem:[#allocation2 + $0x88] sm:$0xff]  ;;  %2073 = vmatprep.subr.bf16.mxu0 %v2072_v3  ;;  %v2078_v13 = vpack.c.bf16 %v168_v10, %v164_v9  ;;  %v172_v15 = vld [vmem:[#allocation2 + $0x80] sm:$0xff]  ;;  %v162_v40 = vld [vmem:[#allocation2 + $0x30] sm:$0xff] }
  0xa8   :  { %v177_v12 = vld [vmem:[#allocation2 + $0xa8] sm:$0xff]  ;;  %2075 = vmatpush1.bf16.msra.mxu0 %v2074_v7  ;;  %v176_v16 = vld [vmem:[#allocation2 + $0xa0] sm:$0xff]  ;;  %v167_v41 = vld [vmem:[#allocation2 + $0x58] sm:$0xff]  ;;  %v2120_v43 = vpack.c.bf16 %v162_v40, %v158_v39  ;;  %2119 = vmatprep.subr.bf16.mxu1 %v2118_v38 }
  0xa9   :  { %2077 = vmatprep.subr.bf16.mxu0 %v2076_v8  ;;  %v2080_v14 = vpack.c.bf16 %v177_v12, %v173_v11  ;;  %v181_v17 = vld [vmem:[#allocation2 + $0xc8] sm:$0xff]  ;;  %v2082_v19 = vpack.c.bf16 %v176_v16, %v172_v15  ;;  %v180_v21 = vld [vmem:[#allocation2 + $0xc0] sm:$0xff]  ;;  %v171_v44 = vld [vmem:[#allocation2 + $0x78] sm:$0xff] }
  0xaa   :  { %v185_v18 = vld [vmem:[#allocation2 + $0xe8] sm:$0xff]  ;;  %v184_v22 = vld [vmem:[#allocation2 + $0xe0] sm:$0xff]  ;;  %v166_v45 = vld [vmem:[#allocation2 + $0x50] sm:$0xff]  ;;  %v2122_v48 = vpack.c.bf16 %v171_v44, %v167_v41  ;;  %2121 = vmatpush1.bf16.msra.mxu1 %v2120_v43 }
  0xab   :  { %v2084_v20 = vpack.c.bf16 %v185_v18, %v181_v17  ;;  %v189_v23 = vld [vmem:[#allocation2 + $0x108] sm:$0xff]  ;;  %v2086_v25 = vpack.c.bf16 %v184_v22, %v180_v21  ;;  %v188_v27 = vld [vmem:[#allocation2 + $0x100] sm:$0xff]  ;;  %v170_v46 = vld [vmem:[#allocation2 + $0x70] sm:$0xff] }
  0xac   :  { %2079 = vmatpush1.bf16.msra.mxu0 %v2078_v13  ;;  %v193_v24 = vld [vmem:[#allocation2 + $0x128] sm:$0xff]  ;;  %v192_v28 = vld [vmem:[#allocation2 + $0x120] sm:$0xff]  ;;  %v175_v49 = vld [vmem:[#allocation2 + $0x98] sm:$0xff]  ;;  %v2124_v51 = vpack.c.bf16 %v170_v46, %v166_v45  ;;  %2123 = vmatprep.subr.bf16.mxu1 %v2122_v48 }
  0xad   :  { %2081 = vmatprep.subr.bf16.mxu0 %v2080_v14  ;;  %v2088_v26 = vpack.c.bf16 %v193_v24, %v189_v23  ;;  %v197_v29 = vld [vmem:[#allocation2 + $0x148] sm:$0xff]  ;;  %v196_v32 = vld [vmem:[#allocation2 + $0x140] sm:$0xff]  ;;  %v2090_v36 = vpack.c.bf16 %v192_v28, %v188_v27  ;;  %v179_v50 = vld [vmem:[#allocation2 + $0xb8] sm:$0xff] }
  0xae   :  { %v201_v30 = vld [vmem:[#allocation2 + $0x168] sm:$0xff]  ;;  %v200_v33 = vld [vmem:[#allocation2 + $0x160] sm:$0xff]  ;;  %v2126_v54 = vpack.c.bf16 %v179_v50, %v175_v49  ;;  %v174_v55 = vld [vmem:[#allocation2 + $0x90] sm:$0xff]  ;;  %2125 = vmatpush1.bf16.msra.mxu1 %v2124_v51 }
  0xaf   :  { %v155_v31 = vld [vmem:[%s3447_s0 + $0x8] sm:$0xff]  ;;  %v2092_v42 = vpack.c.bf16 %v201_v30, %v197_v29  ;;  %v2094_v52 = vpack.c.bf16 %v200_v33, %v196_v32  ;;  %v204_v53 = vld [vmem:[#allocation2 + $0x180] sm:$0xff]  ;;  %v178_v56 = vld [vmem:[#allocation2 + $0xb0] sm:$0xff] }
  0xb0   :  { %2083 = vmatpush1.bf16.msra.mxu0 %v2082_v19  ;;  %1990 = vmatprep.mubr.msk.f32.mxu0 %vm266_vm0, %v155_v31  ;;  %v205_v37 = vld [vmem:[#allocation2 + $0x188] sm:$0xff]  ;;  %v208_v58 = vld [vmem:[#allocation2 + $0x1a0] sm:$0xff]  ;;  %v183_v59 = vld [vmem:[#allocation2 + $0xd8] sm:$0xff]  ;;  %v2128_v63 = vpack.c.bf16 %v178_v56, %v174_v55 }
  0xb1   :  { %2085 = vmatprep.subr.bf16.mxu0 %v2084_v20  ;;  %1993 = vmatprep.mubr.msk.f32.mxu1 %vm266_vm0, %v155_v31  ;;  %v209_v47 = vld [vmem:[#allocation2 + $0x1a8] sm:$0xff]  ;;  %v187_v60 = vld [vmem:[#allocation2 + $0xf8] sm:$0xff]  ;;  %v2098_v0 = vpack.c.bf16 %v208_v58, %v204_v53  ;;  %v212_v1 = vld [vmem:[#allocation2 + $0x1c0] sm:$0xff] }
  0xb2   :  { %v2096_v57 = vpack.c.bf16 %v209_v47, %v205_v37  ;;  %v213_v61 = vld [vmem:[#allocation2 + $0x1c8] sm:$0xff]  ;;  %2127 = vmatprep.subr.bf16.mxu1 %v2126_v54  ;;  %v2130_v2 = vpack.c.bf16 %v187_v60, %v183_v59  ;;  %v182_v3 = vld [vmem:[#allocation2 + $0xd0] sm:$0xff]  ;;  %v216_v6 = vld [vmem:[#allocation2 + $0x1e0] sm:$0xff] }
  0xb3   :  { %v217_v62 = vld [vmem:[#allocation2 + $0x1e8] sm:$0xff]  ;;  %v186_v4 = vld [vmem:[#allocation2 + $0xf0] sm:$0xff]  ;;  %v191_v7 = vld [vmem:[#allocation2 + $0x118] sm:$0xff]  ;;  %2129 = vmatpush1.bf16.msra.mxu1 %v2128_v63  ;;  %v2102_v12 = vpack.c.bf16 %v216_v6, %v212_v1 }
  0xb4   :  { %2087 = vmatpush1.bf16.msra.mxu0 %v2086_v25  ;;  %v2100_v5 = vpack.c.bf16 %v217_v62, %v213_v61  ;;  %v195_v8 = vld [vmem:[#allocation2 + $0x138] sm:$0xff]  ;;  %v221_v9 = vld [vmem:[#allocation2 + $0x208] sm:$0xff]  ;;  %v2132_v11 = vpack.c.bf16 %v186_v4, %v182_v3  ;;  %v220_v13 = vld [vmem:[#allocation2 + $0x200] sm:$0xff]  ;;  %2131 = vmatprep.subr.bf16.mxu1 %v2130_v2 }
  0xb5   :  { %2089 = vmatprep.subr.bf16.mxu0 %v2088_v26  ;;  %v225_v10 = vld [vmem:[#allocation2 + $0x228] sm:$0xff]  ;;  %v2134_v14 = vpack.c.bf16 %v195_v8, %v191_v7  ;;  %v190_v15 = vld [vmem:[#allocation2 + $0x110] sm:$0xff]  ;;  %v224_v18 = vld [vmem:[#allocation2 + $0x220] sm:$0xff] }
  0xb6   :  { %v194_v16 = vld [vmem:[#allocation2 + $0x130] sm:$0xff]  ;;  %v2104_v17 = vpack.c.bf16 %v225_v10, %v221_v9  ;;  %v199_v19 = vld [vmem:[#allocation2 + $0x158] sm:$0xff]  ;;  %v229_v21 = vld [vmem:[#allocation2 + $0x248] sm:$0xff]  ;;  %v2106_v24 = vpack.c.bf16 %v224_v18, %v220_v13 }
  0xb7   :  { %v203_v20 = vld [vmem:[#allocation2 + $0x178] sm:$0xff]  ;;  %v233_v22 = vld [vmem:[#allocation2 + $0x268] sm:$0xff]  ;;  %2133 = vmatpush1.bf16.msra.mxu1 %v2132_v11  ;;  %v2136_v23 = vpack.c.bf16 %v194_v16, %v190_v15  ;;  %v228_v25 = vld [vmem:[#allocation2 + $0x240] sm:$0xff] }
  0xb8   :  { %2091 = vmatpush1.bf16.msra.mxu0 %v2090_v36  ;;  %2135 = vmatprep.subr.bf16.mxu1 %v2134_v14  ;;  %v2138_v26 = vpack.c.bf16 %v203_v20, %v199_v19  ;;  %v198_v27 = vld [vmem:[#allocation2 + $0x150] sm:$0xff]  ;;  %v2108_v29 = vpack.c.bf16 %v233_v22, %v229_v21  ;;  %v232_v30 = vld [vmem:[#allocation2 + $0x260] sm:$0xff]  ;;  %v207_v31 = vld [vmem:[#allocation2 + $0x198] sm:$0xff] }
  0xb9   :  { %2093 = vmatprep.subr.bf16.mxu0 %v2092_v42  ;;  %v202_v28 = vld [vmem:[#allocation2 + $0x170] sm:$0xff]  ;;  %v211_v32 = vld [vmem:[#allocation2 + $0x1b8] sm:$0xff]  ;;  %v237_v33 = vld [vmem:[#allocation2 + $0x288] sm:$0xff]  ;;  %v2110_v36 = vpack.c.bf16 %v232_v30, %v228_v25 }
  0xba   :  { %v241_v34 = vld [vmem:[#allocation2 + $0x2a8] sm:$0x1]  ;;  %v2140_v35 = vpack.c.bf16 %v202_v28, %v198_v27  ;;  %v236_v37 = vld [vmem:[#allocation2 + $0x280] sm:$0xff]  ;;  %v2142_v38 = vpack.c.bf16 %v211_v32, %v207_v31  ;;  %v206_v39 = vld [vmem:[#allocation2 + $0x190] sm:$0xff] }
  0xbb   :  { %2137 = vmatpush1.bf16.msra.mxu1 %v2136_v23  ;;  %v210_v40 = vld [vmem:[#allocation2 + $0x1b0] sm:$0xff]  ;;  %v2112_v41 = vpack.c.bf16 %v241_v34, %v237_v33  ;;  %v240_v42 = vld [vmem:[#allocation2 + $0x2a0] sm:$0x1]  ;;  %v215_v43 = vld [vmem:[#allocation2 + $0x1d8] sm:$0xff] }
  0xbc   :  { %2095 = vmatpush1.bf16.msra.mxu0 %v2094_v52  ;;  %2139 = vmatprep.subr.bf16.mxu1 %v2138_v26  ;;  %v219_v44 = vld [vmem:[#allocation2 + $0x1f8] sm:$0xff]  ;;  %vm3233_vm3 = vmpackc.low %vm270_vm1, %vm3047_vm2  ;;  %v430_v46 = vld [vmem:[#allocation6 + $0x8] sm:$0xff]  ;;  %v2144_v48 = vpack.c.bf16 %v210_v40, %v206_v39  ;;  %v2115_v49 = vpack.c.bf16 %v240_v42, %v236_v37 }
  0xbd   :  { %2097 = vmatprep.subr.bf16.mxu0 %v2096_v57  ;;  %v436_v47 = vld [vmem:[#allocation6 + $0x38] sm:$0xff]  ;;  %v2146_v50 = vpack.c.bf16 %v219_v44, %v215_v43  ;;  %v214_v51 = vld [vmem:[#allocation2 + $0x1d0] sm:$0xff]  ;;  %v429_v56 = vld [vmem:[#allocation6] sm:$0xff] }
  0xbe   :  { %v218_v52 = vld [vmem:[#allocation2 + $0x1f0] sm:$0xff]  ;;  %v223_v53 = vld [vmem:[#allocation2 + $0x218] sm:$0xff]  ;;  %v2164_v55 = vpack.c.bf16 %v436_v47, %v430_v46  ;;  %v3242_v60 = vld [vmem:[%s3447_s0] sm:$0xff] }
  0xbf   :  { %2141 = vmatpush1.bf16.msra.mxu1 %v2140_v35  ;;  %v227_v54 = vld [vmem:[#allocation2 + $0x238] sm:$0xff]  ;;  %v442_v58 = vld [vmem:[#allocation6 + $0x68] sm:$0xff]  ;;  %v2148_v61 = vpack.c.bf16 %v218_v52, %v214_v51 }
  0xc0   :  { %2099 = vmatpush1.bf16.msra.mxu0 %v2098_v0  ;;  %2143 = vmatprep.subr.bf16.mxu1 %v2142_v38  ;;  %v435_v57 = vld [vmem:[#allocation6 + $0x30] sm:$0xff]  ;;  %v448_v59 = vld [vmem:[#allocation6 + $0x98] sm:$0xff]  ;;  %v2150_v62 = vpack.c.bf16 %v227_v54, %v223_v53  ;;  %v454_v7 = vld [vmem:[#allocation6 + $0xc8] sm:$0xff] }
  0xc1   :  { %2101 = vmatprep.subr.bf16.mxu0 %v2100_v5  ;;  %v222_v63 = vld [vmem:[#allocation2 + $0x210] sm:$0xff]  ;;  %v231_v1 = vld [vmem:[#allocation2 + $0x258] sm:$0xff]  ;;  %v2166_v2 = vpack.c.bf16 %v435_v57, %v429_v56  ;;  %v2168_v4 = vpack.c.bf16 %v448_v59, %v442_v58  ;;  %v441_v5 = vld [vmem:[#allocation6 + $0x60] sm:$0xff] }
  0xc2   :  { %v226_v0 = vld [vmem:[#allocation2 + $0x230] sm:$0xff]  ;;  %v235_v3 = vld [vmem:[#allocation2 + $0x278] sm:$0xff]  ;;  %v489_v54 = vld [vmem:[#allocation6 + $0x1e0] sm:$0xff] }
  0xc3   :  { %2145 = vmatpush1.bf16.msra.mxu1 %v2144_v48  ;;  %v447_v6 = vld [vmem:[#allocation6 + $0x90] sm:$0xff]  ;;  %v460_v8 = vld [vmem:[#allocation6 + $0xf8] sm:$0xff]  ;;  %v2152_v9 = vpack.c.bf16 %v226_v0, %v222_v63  ;;  %v2154_v10 = vpack.c.bf16 %v235_v3, %v231_v1  ;;  %v466_v19 = vld [vmem:[#allocation6 + $0x128] sm:$0xff] }
  0xc4   :  { %2103 = vmatpush1.bf16.msra.mxu0 %v2102_v12  ;;  %2147 = vmatprep.subr.bf16.mxu1 %v2146_v50  ;;  %v230_v11 = vld [vmem:[#allocation2 + $0x250] sm:$0xff]  ;;  %v239_v13 = vld [vmem:[#allocation2 + $0x298] sm:$0xff]  ;;  %v2170_v14 = vpack.c.bf16 %v447_v6, %v441_v5  ;;  %v2172_v16 = vpack.c.bf16 %v460_v8, %v454_v7  ;;  %v473_v8 = vld [vmem:[#allocation6 + $0x160] sm:$0xff] }
  0xc5   :  { %2105 = vmatprep.subr.bf16.mxu0 %v2104_v17  ;;  %v234_v12 = vld [vmem:[#allocation2 + $0x270] sm:$0xff]  ;;  %v243_v15 = vld [vmem:[#allocation2 + $0x2b8] sm:$0x1]  ;;  %v453_v17 = vld [vmem:[#allocation6 + $0xc0] sm:$0xff] }
  0xc6   :  { %v459_v18 = vld [vmem:[#allocation6 + $0xf0] sm:$0xff]  ;;  %v472_v20 = vld [vmem:[#allocation6 + $0x158] sm:$0xff]  ;;  %v2156_v21 = vpack.c.bf16 %v234_v12, %v230_v11  ;;  %v2158_v22 = vpack.c.bf16 %v243_v15, %v239_v13  ;;  %v438_v27 = vld [vmem:[#allocation6 + $0x48] sm:$0xff] }
  0xc7   :  { %2149 = vmatpush1.bf16.msra.mxu1 %v2148_v61  ;;  %v238_v23 = vld [vmem:[#allocation2 + $0x290] sm:$0xff]  ;;  %v432_v25 = vld [vmem:[#allocation6 + $0x18] sm:$0xff]  ;;  %v2174_v26 = vpack.c.bf16 %v459_v18, %v453_v17  ;;  %v2176_v28 = vpack.c.bf16 %v472_v20, %v466_v19  ;;  %v461_v61 = vld [vmem:[#allocation6 + $0x100] sm:$0xff] }
  0xc8   :  { %2107 = vmatpush1.bf16.msra.mxu0 %v2106_v24  ;;  %2151 = vmatprep.subr.bf16.mxu1 %v2150_v62  ;;  %v242_v24 = vld [vmem:[#allocation2 + $0x2b0] sm:$0x1]  ;;  %v471_v30 = vld [vmem:[#allocation6 + $0x150] sm:$0xff]  ;;  %v484_v32 = vld [vmem:[#allocation6 + $0x1b8] sm:$0xff]  ;;  %v2292_v34 = vpack.c.bf16 %v438_v27, %v432_v25 }
  0xc9   :  { %2109 = vmatprep.subr.bf16.mxu0 %v2108_v29  ;;  %v465_v29 = vld [vmem:[#allocation6 + $0x120] sm:$0xff]  ;;  %v478_v31 = vld [vmem:[#allocation6 + $0x188] sm:$0xff]  ;;  %v2161_v33 = vpack.c.bf16 %v242_v24, %v238_v23  ;;  %v431_v35 = vld [vmem:[#allocation6 + $0x10] sm:$0xff] }
  0xca   :  { %v444_v37 = vld [vmem:[#allocation6 + $0x78] sm:$0xff]  ;;  %v2178_v38 = vpack.c.bf16 %v471_v30, %v465_v29  ;;  %v450_v39 = vld [vmem:[#allocation6 + $0xa8] sm:$0xff]  ;;  %v2180_v40 = vpack.c.bf16 %v484_v32, %v478_v31  ;;  %v483_v42 = vld [vmem:[#allocation6 + $0x1b0] sm:$0xff] }
  0xcb   :  { %2153 = vmatpush1.bf16.msra.mxu1 %v2152_v9  ;;  %v490_v43 = vld [vmem:[#allocation6 + $0x1e8] sm:$0xff]  ;;  %v496_v44 = vld [vmem:[#allocation6 + $0x218] sm:$0xff]  ;;  %v2296_v47 = vpack.c.bf16 %v450_v39, %v444_v37  ;;  %v443_v48 = vld [vmem:[#allocation6 + $0x70] sm:$0xff] }
  0xcc   :  { %2111 = vmatpush1.bf16.msra.mxu0 %v2110_v36  ;;  %2155 = vmatprep.subr.bf16.mxu1 %v2154_v10  ;;  %v437_v36 = vld [vmem:[#allocation6 + $0x40] sm:$0xff]  ;;  %v456_v50 = vld [vmem:[#allocation6 + $0xd8] sm:$0xff]  ;;  %v462_v52 = vld [vmem:[#allocation6 + $0x108] sm:$0xff]  ;;  %v2184_v53 = vpack.c.bf16 %v496_v44, %v490_v43 }
  0xcd   :  { %2114 = vmatprep.subr.msk.bf16.mxu0 %vm3233_vm3, %v2112_v41  ;;  %v477_v41 = vld [vmem:[#allocation6 + $0x180] sm:$0xff]  ;;  %v2294_v46 = vpack.c.bf16 %v437_v36, %v431_v35  ;;  %v502_v56 = vld [vmem:[#allocation6 + $0x248] sm:$0xff]  ;;  %v508_v57 = vld [vmem:[#allocation6 + $0x278] sm:$0xff]  ;;  %v2300_v58 = vpack.c.bf16 %v462_v52, %v456_v50 }
  0xce   :  { %v2182_v51 = vpack.c.bf16 %v483_v42, %v477_v41  ;;  %v455_v59 = vld [vmem:[#allocation6 + $0xd0] sm:$0xff]  ;;  %v468_v62 = vld [vmem:[#allocation6 + $0x138] sm:$0xff]  ;;  %v474_v0 = vld [vmem:[#allocation6 + $0x168] sm:$0xff]  ;;  %v2188_v1 = vpack.c.bf16 %v508_v57, %v502_v56 }
  0xcf   :  { %2157 = vmatpush1.bf16.msra.mxu1 %v2156_v21  ;;  %v507_v3 = vld [vmem:[#allocation6 + $0x270] sm:$0xff]  ;;  %v520_v5 = vld [vmem:[#allocation6 + $0x2d8] sm:$0xff]  ;;  %v2304_v6 = vpack.c.bf16 %v474_v0, %v468_v62  ;;  %v486_v11 = vld [vmem:[#allocation6 + $0x1c8] sm:$0xff] }
  0xd0   :  { %2117 = vmatpush1.bf16.msk.msra.mxu0 %vm3233_vm3, %v2115_v49  ;;  %2160 = vmatprep.subr.msk.bf16.mxu1 %vm3233_vm3, %v2158_v22  ;;  %v449_v49 = vld [vmem:[#allocation6 + $0xa0] sm:$0xff]  ;;  %v467_v7 = vld [vmem:[#allocation6 + $0x130] sm:$0xff]  ;;  %v480_v9 = vld [vmem:[#allocation6 + $0x198] sm:$0xff] }
  0xd1   :  { %2165 = vmatprep.subr.bf16.mxu0 %v2164_v55  ;;  %v495_v55 = vld [vmem:[#allocation6 + $0x210] sm:$0xff]  ;;  %v2298_v45 = vpack.c.bf16 %v449_v49, %v443_v48  ;;  %v513_v13 = vld [vmem:[#allocation6 + $0x2a0] sm:$0xff]  ;;  %v526_v15 = vld [vmem:[#allocation6 + $0x308] sm:$0xff]  ;;  %v2306_v17 = vpack.c.bf16 %v473_v8, %v467_v7  ;;  %v2308_v18 = vpack.c.bf16 %v486_v11, %v480_v9 }
  0xd2   :  { %v2186_v63 = vpack.c.bf16 %v495_v55, %v489_v54  ;;  %v479_v19 = vld [vmem:[#allocation6 + $0x190] sm:$0xff]  ;;  %v485_v20 = vld [vmem:[#allocation6 + $0x1c0] sm:$0xff]  ;;  %v492_v21 = vld [vmem:[#allocation6 + $0x1f8] sm:$0xff] }
  0xd3   :  { %348 = vmatmul.mubr.f32.vlgmr.msra.gmra.mrb[0].mxu0 %v3242_v60  ;;  %2163 = vmatpush1.bf16.msk.msra.mxu1 %vm3233_vm3, %v2161_v33  ;;  %v498_v23 = vld [vmem:[#allocation6 + $0x228] sm:$0xff]  ;;  %v525_v25 = vld [vmem:[#allocation6 + $0x300] sm:$0xff]  ;;  %v2310_v29 = vpack.c.bf16 %v485_v20, %v479_v19  ;;  %v491_v31 = vld [vmem:[#allocation6 + $0x1f0] sm:$0xff] }
  0xd4   :  { %2167 = vmatpush1.bf16.msra.mxu0 %v2166_v2  ;;  %2293 = vmatprep.subr.bf16.mxu1 %v2292_v34  ;;  %v501_v2 = vld [vmem:[#allocation6 + $0x240] sm:$0xff]  ;;  %v538_v27 = vld [vmem:[#allocation6 + $0x368] sm:$0xff]  ;;  %v2312_v30 = vpack.c.bf16 %v498_v23, %v492_v21  ;;  %v504_v33 = vld [vmem:[#allocation6 + $0x258] sm:$0xff] }
  0xd5   :  { %2169 = vmatprep.subr.bf16.mxu0 %v2168_v4  ;;  %v514_v4 = vld [vmem:[#allocation6 + $0x2a8] sm:$0xff]  ;;  %v2190_v10 = vpack.c.bf16 %v507_v3, %v501_v2  ;;  %v497_v32 = vld [vmem:[#allocation6 + $0x220] sm:$0xff]  ;;  %v503_v43 = vld [vmem:[#allocation6 + $0x250] sm:$0xff] }
  0xd6   :  { %419 = vmatmul.mubr.f32.vlgmr.msra.gmra.mrb[0].mxu1 %v3242_v60  ;;  %v2302_v60 = vpack.c.bf16 %v461_v61, %v455_v59  ;;  %v2192_v12 = vpack.c.bf16 %v520_v5, %v514_v4  ;;  %v510_v35 = vld [vmem:[#allocation6 + $0x288] sm:$0xff]  ;;  %v537_v37 = vld [vmem:[#allocation6 + $0x360] sm:$0xff]  ;;  %v2314_v41 = vpack.c.bf16 %v497_v32, %v491_v31  ;;  %v515_v56 = vld [vmem:[#allocation6 + $0x2b0] sm:$0xff] }
  0xd7   :  { %2295 = vmatpush1.bf16.msra.mxu1 %v2294_v46  ;;  %v550_v39 = vld [vmem:[#allocation6 + $0x3c8] sm:$0xff]  ;;  %v2316_v42 = vpack.c.bf16 %v510_v35, %v504_v33  ;;  %v509_v44 = vld [vmem:[#allocation6 + $0x280] sm:$0xff]  ;;  %v516_v46 = vld [vmem:[#allocation6 + $0x2b8] sm:$0xff] }
  0xd8   :  { %2171 = vmatpush1.bf16.msra.mxu0 %v2170_v14  ;;  %2297 = vmatprep.subr.bf16.mxu1 %v2296_v47  ;;  %v519_v14 = vld [vmem:[#allocation6 + $0x2d0] sm:$0xff]  ;;  %v522_v48 = vld [vmem:[#allocation6 + $0x2e8] sm:$0xff]  ;;  %v549_v50 = vld [vmem:[#allocation6 + $0x3c0] sm:$0xff]  ;;  %v2318_v54 = vpack.c.bf16 %v509_v44, %v503_v43 }
  0xd9   :  { %2173 = vmatprep.subr.bf16.mxu0 %v2172_v16  ;;  %v532_v16 = vld [vmem:[#allocation6 + $0x338] sm:$0xff]  ;;  %v2194_v22 = vpack.c.bf16 %v519_v14, %v513_v13  ;;  %v562_v52 = vld [vmem:[#allocation6 + $0x428] sm:$0xff]  ;;  %v2320_v55 = vpack.c.bf16 %v522_v48, %v516_v46  ;;  %v521_v57 = vld [vmem:[#allocation6 + $0x2e0] sm:$0xff] }
  0xda   :  { %v2196_v24 = vpack.c.bf16 %v532_v16, %v526_v15  ;;  %v534_v59 = vld [vmem:[#allocation6 + $0x348] sm:$0xff]  ;;  %v561_v62 = vld [vmem:[#allocation6 + $0x420] sm:$0xff]  ;;  %v2322_v2 = vpack.c.bf16 %v521_v57, %v515_v56  ;;  %v527_v4 = vld [vmem:[#allocation6 + $0x310] sm:$0xff] }
  0xdb   :  { %2299 = vmatpush1.bf16.msra.mxu1 %v2298_v45  ;;  %v528_v45 = vld [vmem:[#allocation6 + $0x318] sm:$0xff]  ;;  %v574_v0 = vld [vmem:[#allocation6 + $0x488] sm:$0xff]  ;;  %v533_v5 = vld [vmem:[#allocation6 + $0x340] sm:$0xff] }
  0xdc   :  { %2175 = vmatpush1.bf16.msra.mxu0 %v2174_v26  ;;  %2301 = vmatprep.subr.bf16.mxu1 %v2300_v58  ;;  %v531_v26 = vld [vmem:[#allocation6 + $0x330] sm:$0xff]  ;;  %v2324_v3 = vpack.c.bf16 %v534_v59, %v528_v45  ;;  %v546_v7 = vld [vmem:[#allocation6 + $0x3a8] sm:$0xff]  ;;  %v573_v9 = vld [vmem:[#allocation6 + $0x480] sm:$0xff]  ;;  %v2326_v13 = vpack.c.bf16 %v533_v5, %v527_v4 }
  0xdd   :  { %2177 = vmatprep.subr.bf16.mxu0 %v2176_v28  ;;  %v544_v28 = vld [vmem:[#allocation6 + $0x398] sm:$0xff]  ;;  %v2198_v34 = vpack.c.bf16 %v531_v26, %v525_v25  ;;  %v586_v11 = vld [vmem:[#allocation6 + $0x4e8] sm:$0xff]  ;;  %v539_v15 = vld [vmem:[#allocation6 + $0x370] sm:$0xff] }
  0xde   :  { %v2200_v36 = vpack.c.bf16 %v544_v28, %v538_v27  ;;  %v545_v16 = vld [vmem:[#allocation6 + $0x3a0] sm:$0xff]  ;;  %v558_v19 = vld [vmem:[#allocation6 + $0x408] sm:$0xff]  ;;  %v551_v27 = vld [vmem:[#allocation6 + $0x3d0] sm:$0xff] }
  0xdf   :  { %2303 = vmatpush1.bf16.msra.mxu1 %v2302_v60  ;;  %v540_v60 = vld [vmem:[#allocation6 + $0x378] sm:$0xff]  ;;  %v585_v21 = vld [vmem:[#allocation6 + $0x4e0] sm:$0xff]  ;;  %v598_v23 = vld [vmem:[#allocation6 + $0x548] sm:$0xff]  ;;  %v2330_v25 = vpack.c.bf16 %v545_v16, %v539_v15 }
  0xe0   :  { %2179 = vmatpush1.bf16.msra.mxu0 %v2178_v38  ;;  %2305 = vmatprep.subr.bf16.mxu1 %v2304_v6  ;;  %v543_v38 = vld [vmem:[#allocation6 + $0x390] sm:$0xff]  ;;  %v2328_v14 = vpack.c.bf16 %v546_v7, %v540_v60  ;;  %v557_v28 = vld [vmem:[#allocation6 + $0x400] sm:$0xff]  ;;  %v570_v31 = vld [vmem:[#allocation6 + $0x468] sm:$0xff] }
  0xe1   :  { %2181 = vmatprep.subr.bf16.mxu0 %v2180_v40  ;;  %v556_v40 = vld [vmem:[#allocation6 + $0x3f8] sm:$0xff]  ;;  %v2202_v47 = vpack.c.bf16 %v543_v38, %v537_v37  ;;  %v597_v33 = vld [vmem:[#allocation6 + $0x540] sm:$0xff]  ;;  %v2334_v35 = vpack.c.bf16 %v557_v28, %v551_v27  ;;  %v563_v37 = vld [vmem:[#allocation6 + $0x430] sm:$0xff] }
  0xe2   :  { %v2204_v49 = vpack.c.bf16 %v556_v40, %v550_v39  ;;  %v569_v38 = vld [vmem:[#allocation6 + $0x460] sm:$0xff]  ;;  %v576_v40 = vld [vmem:[#allocation6 + $0x498] sm:$0xff]  ;;  %v575_v44 = vld [vmem:[#allocation6 + $0x490] sm:$0xff] }
  0xe3   :  { %2307 = vmatpush1.bf16.msra.mxu1 %v2306_v17  ;;  %v552_v17 = vld [vmem:[#allocation6 + $0x3d8] sm:$0xff]  ;;  %v581_v46 = vld [vmem:[#allocation6 + $0x4c0] sm:$0xff]  ;;  %v594_v48 = vld [vmem:[#allocation6 + $0x528] sm:$0xff] }
  0xe4   :  { %2183 = vmatpush1.bf16.msra.mxu0 %v2182_v51  ;;  %2309 = vmatprep.subr.bf16.mxu1 %v2308_v18  ;;  %v555_v51 = vld [vmem:[#allocation6 + $0x3f0] sm:$0xff]  ;;  %v2332_v26 = vpack.c.bf16 %v558_v19, %v552_v17  ;;  %v605_v45 = vld [vmem:[#allocation6 + $0x580] sm:$0xff]  ;;  %v610_v59 = vld [vmem:[#allocation6 + $0x5a8] sm:$0xff] }
  0xe5   :  { %2185 = vmatprep.subr.bf16.mxu0 %v2184_v53  ;;  %v568_v53 = vld [vmem:[#allocation6 + $0x458] sm:$0xff]  ;;  %v2206_v58 = vpack.c.bf16 %v555_v51, %v549_v50  ;;  %v587_v51 = vld [vmem:[#allocation6 + $0x4f0] sm:$0xff]  ;;  %v617_v60 = vld [vmem:[#allocation6 + $0x5e0] sm:$0xff] }
  0xe6   :  { %v2208_v61 = vpack.c.bf16 %v568_v53, %v562_v52  ;;  %v593_v52 = vld [vmem:[#allocation6 + $0x520] sm:$0xff]  ;;  %v600_v53 = vld [vmem:[#allocation6 + $0x558] sm:$0xff]  ;;  %v599_v57 = vld [vmem:[#allocation6 + $0x550] sm:$0xff] }
  0xe7   :  { %2311 = vmatpush1.bf16.msra.mxu1 %v2310_v29  ;;  %v564_v29 = vld [vmem:[#allocation6 + $0x438] sm:$0xff]  ;;  %v611_v5 = vld [vmem:[#allocation6 + $0x5b0] sm:$0xff]  ;;  %v622_v7 = vld [vmem:[#allocation6 + $0x608] sm:$0xff] }
  0xe8   :  { %2187 = vmatpush1.bf16.msra.mxu0 %v2186_v63  ;;  %2313 = vmatprep.subr.bf16.mxu1 %v2312_v30  ;;  %v567_v63 = vld [vmem:[#allocation6 + $0x450] sm:$0xff]  ;;  %v3257_v16 = vld [vmem:[#allocation4] sm:$0xf]  ;;  %v634_v27 = vld [vmem:[#allocation6 + $0x668] sm:$0xff] }
  0xe9   :  { %2189 = vmatprep.subr.bf16.mxu0 %v2188_v1  ;;  %v580_v1 = vld [vmem:[#allocation6 + $0x4b8] sm:$0xff]  ;;  %v2210_v6 = vpack.c.bf16 %v567_v63, %v561_v62 }
  0xea   :  { %v2212_v8 = vpack.c.bf16 %v580_v1, %v574_v0  ;;  %v612_v62 = vld [vmem:[#allocation6 + $0x5b8] sm:$0xff]  ;;  %v618_v0 = vld [vmem:[#allocation6 + $0x5e8] sm:$0xff]  ;;  %v609_v1 = vld [vmem:[#allocation6 + $0x5a0] sm:$0xff] }
  0xeb   :  { %2315 = vmatpush1.bf16.msra.mxu1 %v2314_v41  ;;  %v582_v41 = vld [vmem:[#allocation6 + $0x4c8] sm:$0xff] }
  0xec   :  { %2191 = vmatpush1.bf16.msra.mxu0 %v2190_v10  ;;  %2317 = vmatprep.subr.bf16.mxu1 %v2316_v42  ;;  %v579_v10 = vld [vmem:[#allocation6 + $0x4b0] sm:$0xff]  ;;  %v2338_v42 = vpack.c.bf16 %v569_v38, %v563_v37  ;;  %v2340_v43 = vpack.c.bf16 %v582_v41, %v576_v40  ;;  %v641_v41 = vld [vmem:[#allocation6 + $0x6a0] sm:$0xff] }
  0xed   :  { %2193 = vmatprep.subr.bf16.mxu0 %v2192_v12  ;;  %v592_v12 = vld [vmem:[#allocation6 + $0x518] sm:$0xff]  ;;  %v2214_v18 = vpack.c.bf16 %v579_v10, %v573_v9  ;;  %v635_v40 = vld [vmem:[#allocation6 + $0x670] sm:$0xff] }
  0xee   :  { %v2216_v20 = vpack.c.bf16 %v592_v12, %v586_v11  ;;  %v624_v9 = vld [vmem:[#allocation6 + $0x618] sm:$0xff]  ;;  %v630_v11 = vld [vmem:[#allocation6 + $0x648] sm:$0xff] }
  0xef   :  { %2319 = vmatpush1.bf16.msra.mxu1 %v2318_v54  ;;  %v606_v54 = vld [vmem:[#allocation6 + $0x588] sm:$0xff]  ;;  %v2356_v12 = vpack.c.bf16 %v630_v11, %v624_v9  ;;  %v669_v11 = vld [vmem:[#allocation6 + $0x780] sm:$0xff] }
  0xf0   :  { %2195 = vmatpush1.bf16.msra.mxu0 %v2194_v22  ;;  %2321 = vmatprep.subr.bf16.mxu1 %v2320_v55  ;;  %v591_v22 = vld [vmem:[#allocation6 + $0x510] sm:$0xff]  ;;  %v2346_v55 = vpack.c.bf16 %v593_v52, %v587_v51  ;;  %v2348_v56 = vpack.c.bf16 %v606_v54, %v600_v53  ;;  %v653_v54 = vld [vmem:[#allocation6 + $0x700] sm:$0xff] }
  0xf1   :  { %2197 = vmatprep.subr.bf16.mxu0 %v2196_v24  ;;  %v604_v24 = vld [vmem:[#allocation6 + $0x578] sm:$0xff]  ;;  %v2218_v30 = vpack.c.bf16 %v591_v22, %v585_v21  ;;  %v621_v21 = vld [vmem:[#allocation6 + $0x600] sm:$0xff]  ;;  %v627_v22 = vld [vmem:[#allocation6 + $0x630] sm:$0xff] }
  0xf2   :  { %v2220_v32 = vpack.c.bf16 %v604_v24, %v598_v23  ;;  %v647_v53 = vld [vmem:[#allocation6 + $0x6d0] sm:$0xff] }
  0xf3   :  { %2323 = vmatpush1.bf16.msra.mxu1 %v2322_v2  ;;  %v615_v2 = vld [vmem:[#allocation6 + $0x5d0] sm:$0xff] }
  0xf4   :  { %2199 = vmatpush1.bf16.msra.mxu0 %v2198_v34  ;;  %2325 = vmatprep.subr.bf16.mxu1 %v2324_v3  ;;  %v603_v34 = vld [vmem:[#allocation6 + $0x570] sm:$0xff]  ;;  %v2352_v3 = vpack.c.bf16 %v618_v0, %v612_v62  ;;  %v2226_v4 = vpack.c.bf16 %v615_v2, %v609_v1  ;;  %v657_v62 = vld [vmem:[#allocation6 + $0x720] sm:$0xff] }
  0xf5   :  { %2201 = vmatprep.subr.bf16.mxu0 %v2200_v36  ;;  %v2336_v36 = vpack.c.bf16 %v570_v31, %v564_v29  ;;  %v2222_v39 = vpack.c.bf16 %v603_v34, %v597_v33  ;;  %v640_v29 = vld [vmem:[#allocation6 + $0x698] sm:$0xff]  ;;  %v642_v31 = vld [vmem:[#allocation6 + $0x6a8] sm:$0xff]  ;;  %v2230_v33 = vpack.c.bf16 %v627_v22, %v621_v21  ;;  %v659_v2 = vld [vmem:[#allocation6 + $0x730] sm:$0xff] }
  0xf6   :  { %v2232_v38 = vpack.c.bf16 %v640_v29, %v634_v27  ;;  %v677_v21 = vld [vmem:[#allocation6 + $0x7c0] sm:$0xff]  ;;  %v682_v22 = vld [vmem:[#allocation6 + $0x7e8] sm:$0xff] }
  0xf7   :  { %2327 = vmatpush1.bf16.msra.mxu1 %v2326_v13  ;;  %v246_v13 = vlaneseq }
  0xf8   :  { %2203 = vmatpush1.bf16.msra.mxu0 %v2202_v47  ;;  %2329 = vmatprep.subr.bf16.mxu1 %v2328_v14  ;;  %v588_v47 = vld [vmem:[#allocation6 + $0x4f8] sm:$0xff] }
  0xf9   :  { %2205 = vmatprep.subr.bf16.mxu0 %v2204_v49  ;;  %v2342_v49 = vpack.c.bf16 %v581_v46, %v575_v44  ;;  %v2344_v50 = vpack.c.bf16 %v594_v48, %v588_v47  ;;  %v3252_v14 = vshrl.u32 %v246_v13, 7  ;;  %v648_v44 = vld [vmem:[#allocation6 + $0x6d8] sm:$0xff]  ;;  %v654_v46 = vld [vmem:[#allocation6 + $0x708] sm:$0xff]  ;;  %v2362_v48 = vpack.c.bf16 %v641_v41, %v635_v40 }
  0xfa   :  { %v2364_v52 = vpack.c.bf16 %v654_v46, %v648_v44  ;;  %v696_v40 = vld [vmem:[#allocation6 + $0x858] sm:$0xff]  ;;  %v702_v41 = vld [vmem:[#allocation6 + $0x888] sm:$0xff]  ;;  %v693_v44 = vld [vmem:[#allocation6 + $0x840] sm:$0xff] }
  0xfb   :  { %2331 = vmatpush1.bf16.msra.mxu1 %v2330_v25  ;;  %v3255_v15 = vsub.s32 0, %v3252_v14  ;;  %v3260_v17 = vsub.s32 1, %v3252_v14  ;;  %v623_v25 = vld [vmem:[#allocation6 + $0x610] sm:$0xff] }
  0xfc   :  { %2207 = vmatpush1.bf16.msra.mxu0 %v2206_v58  ;;  %2333 = vmatprep.subr.bf16.mxu1 %v2332_v26  ;;  %v2350_v58 = vpack.c.bf16 %v605_v45, %v599_v57  ;;  %v629_v26 = vld [vmem:[#allocation6 + $0x640] sm:$0xff]  ;;  %v664_v57 = vld [vmem:[#allocation6 + $0x758] sm:$0xff]  ;;  %v699_v46 = vld [vmem:[#allocation6 + $0x870] sm:$0xff] }
  0xfd   :  { %2209 = vmatprep.subr.bf16.mxu0 %v2208_v61  ;;  %v616_v61 = vld [vmem:[#allocation6 + $0x5d8] sm:$0xff]  ;;  %v253_v19 = vrot.slane %v3257_v16, %v3260_v17  ;;  %v2358_v34 = vpack.c.bf16 %v629_v26, %v623_v25  ;;  %v690_v26 = vld [vmem:[#allocation6 + $0x828] sm:$0xff] }
  0xfe   :  { %v2224_v63 = vpack.c.bf16 %v616_v61, %v610_v59  ;;  %v660_v45 = vld [vmem:[#allocation6 + $0x738] sm:$0xff]  ;;  %v2366_v61 = vpack.c.bf16 %v653_v54, %v647_v53  ;;  %v714_v54 = vld [vmem:[#allocation6 + $0x8e8] sm:$0xff] }
  0xff   :  { %2335 = vmatpush1.bf16.msra.mxu1 %v2334_v35  ;;  %v633_v35 = vld [vmem:[#allocation6 + $0x660] sm:$0xff]  ;;  %v684_v25 = vld [vmem:[#allocation6 + $0x7f8] sm:$0xff] }
 0x100   :  { %2211 = vmatpush1.bf16.msra.mxu0 %v2210_v6  ;;  %2337 = vmatprep.subr.bf16.mxu1 %v2336_v36  ;;  %v2354_v6 = vpack.c.bf16 %v617_v60, %v611_v5  ;;  %v639_v36 = vld [vmem:[#allocation6 + $0x690] sm:$0xff]  ;;  %v676_v60 = vld [vmem:[#allocation6 + $0x7b8] sm:$0xff] }
 0x101   :  { %2213 = vmatprep.subr.bf16.mxu0 %v2212_v8  ;;  %v628_v8 = vld [vmem:[#allocation6 + $0x638] sm:$0xff]  ;;  %v2234_v47 = vpack.c.bf16 %v639_v36, %v633_v35  ;;  %v683_v35 = vld [vmem:[#allocation6 + $0x7f0] sm:$0xff]  ;;  %v689_v36 = vld [vmem:[#allocation6 + $0x820] sm:$0xff] }
 0x102   :  { %v2228_v10 = vpack.c.bf16 %v628_v8, %v622_v7  ;;  %v678_v7 = vld [vmem:[#allocation6 + $0x7c8] sm:$0xff]  ;;  %v708_v53 = vld [vmem:[#allocation6 + $0x8b8] sm:$0xff] }
 0x103   :  { %2339 = vmatpush1.bf16.msra.mxu1 %v2338_v42  ;;  %v646_v42 = vld [vmem:[#allocation6 + $0x6c8] sm:$0xff] }
 0x104   :  { %2215 = vmatpush1.bf16.msra.mxu0 %v2214_v18  ;;  %2341 = vmatprep.subr.bf16.mxu1 %v2340_v43  ;;  %v249_v18 = vrot.slane %v3257_v16, %v3255_v15  ;;  %v652_v43 = vld [vmem:[#allocation6 + $0x6f8] sm:$0xff] }
 0x105   :  { %2217 = vmatprep.subr.bf16.mxu0 %v2216_v20  ;;  %v2236_v51 = vpack.c.bf16 %v652_v43, %v646_v42  ;;  %v2378_v43 = vpack.c.bf16 %v689_v36, %v683_v35  ;;  %v741_v36 = vld [vmem:[#allocation6 + $0x9c0] sm:$0xff] }
 0x107   :  { %2343 = vmatpush1.bf16.msra.mxu1 %v2342_v49  ;;  %v645_v49 = vld [vmem:[#allocation6 + $0x6c0] sm:$0xff] }
 0x108   :  { %2219 = vmatpush1.bf16.msra.mxu0 %v2218_v30  ;;  %2345 = vmatprep.subr.bf16.mxu1 %v2344_v50  ;;  %v636_v30 = vld [vmem:[#allocation6 + $0x678] sm:$0xff]  ;;  %v651_v50 = vld [vmem:[#allocation6 + $0x6f0] sm:$0xff] }
 0x109   :  { %2221 = vmatprep.subr.bf16.mxu0 %v2220_v32  ;;  %v2238_v59 = vpack.c.bf16 %v651_v50, %v645_v49  ;;  %v695_v49 = vld [vmem:[#allocation6 + $0x850] sm:$0xff]  ;;  %v701_v50 = vld [vmem:[#allocation6 + $0x880] sm:$0xff] }
 0x10b   :  { %2347 = vmatpush1.bf16.msra.mxu1 %v2346_v55  ;;  %v658_v55 = vld [vmem:[#allocation6 + $0x728] sm:$0xff] }
 0x10c   :  { %2223 = vmatpush1.bf16.msra.mxu0 %v2222_v39  ;;  %2349 = vmatprep.subr.bf16.mxu1 %v2348_v56  ;;  %v2360_v39 = vpack.c.bf16 %v642_v31, %v636_v30  ;;  %v260_v56 = vsub.s32 3, %v3252_v14  ;;  %v2240_v0 = vpack.c.bf16 %v664_v57, %v658_v55  ;;  %v681_v30 = vld [vmem:[#allocation6 + $0x7e0] sm:$0xff]  ;;  %v687_v31 = vld [vmem:[#allocation6 + $0x810] sm:$0xff]  ;;  %v2254_v55 = vpack.c.bf16 %v699_v46, %v693_v44  ;;  %v760_v44 = vld [vmem:[#allocation6 + $0xa58] sm:$0xff] }
 0x10d   :  { %2225 = vmatprep.subr.bf16.mxu0 %v2224_v63  ;;  %v663_v63 = vld [vmem:[#allocation6 + $0x750] sm:$0xff]  ;;  %v2250_v42 = vpack.c.bf16 %v687_v31, %v681_v30  ;;  %v2382_v57 = vpack.c.bf16 %v701_v50, %v695_v49  ;;  %v748_v30 = vld [vmem:[#allocation6 + $0x9f8] sm:$0xff]  ;;  %v753_v50 = vld [vmem:[#allocation6 + $0xa20] sm:$0xff] }
 0x10e   :  { %v261_v5 = vrot.slane %v3257_v16, %v260_v56  ;;  %v2242_v9 = vpack.c.bf16 %v663_v63, %v657_v62  ;;  %v707_v62 = vld [vmem:[#allocation6 + $0x8b0] sm:$0xff]  ;;  %v713_v63 = vld [vmem:[#allocation6 + $0x8e0] sm:$0xff]  ;;  %v744_v31 = vld [vmem:[#allocation6 + $0x9d8] sm:$0xff] }
 0x10f   :  { %2351 = vmatpush1.bf16.msra.mxu1 %v2350_v58  ;;  %v666_v58 = vld [vmem:[#allocation6 + $0x768] sm:$0xff]  ;;  %v756_v46 = vld [vmem:[#allocation6 + $0xa38] sm:$0xff] }
 0x110   :  { %2353 = vmatprep.subr.bf16.mxu1 %v2352_v3  ;;  %2227 = vmatpush1.bf16.msra.mxu0 %v2226_v4  ;;  %v2368_v1 = vpack.c.bf16 %v666_v58, %v660_v45  ;;  %v665_v3 = vld [vmem:[#allocation6 + $0x760] sm:$0xff]  ;;  %v670_v4 = vld [vmem:[#allocation6 + $0x788] sm:$0xff]  ;;  %v711_v58 = vld [vmem:[#allocation6 + $0x8d0] sm:$0xff] }
 0x111   :  { %2229 = vmatprep.subr.bf16.mxu0 %v2228_v10  ;;  %v2370_v10 = vpack.c.bf16 %v665_v3, %v659_v2  ;;  %v705_v45 = vld [vmem:[#allocation6 + $0x8a0] sm:$0xff]  ;;  %v720_v2 = vld [vmem:[#allocation6 + $0x918] sm:$0xff]  ;;  %v726_v3 = vld [vmem:[#allocation6 + $0x948] sm:$0xff] }
 0x113   :  { %2355 = vmatpush1.bf16.msra.mxu1 %v2354_v6  ;;  %v672_v6 = vld [vmem:[#allocation6 + $0x798] sm:$0xff] }
 0x114   :  { %2357 = vmatprep.subr.bf16.mxu1 %v2356_v12  ;;  %v675_v12 = vld [vmem:[#allocation6 + $0x7b0] sm:$0xff] }
 0x1a6   :  { %v349_v20 = vpop.f32.mrb[0].mxu0 }
 0x1a7   :  { %v350_v23 = vadd.f32 %v349_v20, %v249_v18  ;;  %v351_v24 = vpop.f32.mrb[1].mxu0  ;;  %v2244_v18 = vpack.c.bf16 %v676_v60, %v670_v4  ;;  %v671_v20 = vld [vmem:[#allocation6 + $0x790] sm:$0xff]  ;;  %v2258_v4 = vpack.c.bf16 %v711_v58, %v705_v45  ;;  %v717_v60 = vld [vmem:[#allocation6 + $0x900] sm:$0xff]  ;;  %v772_v45 = vld [vmem:[#allocation6 + $0xab8] sm:$0xff] }
 0x1a8   :  { %v352_v28 = vadd.f32 %v351_v24, %v253_v19  ;;  %v2372_v19 = vpack.c.bf16 %v678_v7, %v672_v6  ;;  %v688_v24 = vld [vmem:[#allocation6 + $0x818] sm:$0xff]  ;;  %v2374_v29 = vpack.c.bf16 %v677_v21, %v671_v20  ;;  %v723_v6 = vld [vmem:[#allocation6 + $0x930] sm:$0xff] }
 0x1a9   :  { %v3268_v37 = vmax.f32 %v350_v23, 0.0  ;;  %v3278_v8 = vpop.f32.mrb[0].mxu1  ;;  %v2262_v20 = vpack.c.bf16 %v723_v6, %v717_v60  ;;  %v768_v58 = vld [vmem:[#allocation6 + $0xa98] sm:$0xff] }
 0x1aa   :  { %v3266_v32 = vmax.f32 %v352_v28, 0.0  ;;  %v422_v13 = vpop.f32.mrb[1].mxu1  ;;  %v2246_v28 = vpack.c.bf16 %v675_v12, %v669_v11  ;;  %v725_v11 = vld [vmem:[#allocation6 + $0x940] sm:$0xff]  ;;  %v730_v12 = vld [vmem:[#allocation6 + $0x968] sm:$0xff]  ;;  %v784_v60 = vld [vmem:[#allocation6 + $0xb18] sm:$0xff] }
 0x1ab   :  { %v423_v23 = vadd.f32 %v422_v13, %v261_v5  ;;  %v2386_v5 = vpack.c.bf16 %v713_v63, %v707_v62  ;;  %v736_v13 = vld [vmem:[#allocation6 + $0x998] sm:$0xff]  ;;  %v765_v63 = vld [vmem:[#allocation6 + $0xa80] sm:$0xff] }
 0x1ac   :  { %909 = vmatprep.mubr.f32.mxu0 %v3266_v32  ;;  %1051 = vmatprep.mubr.f32.mxu1 %v3266_v32  ;;  %v780_v6 = vld [vmem:[#allocation6 + $0xaf8] sm:$0xff] }
 0x1ad   :  { %910 = vmatmul.mubr.f32.vlgmr.msra.gmra.mrb[2].mxu0 %v3268_v37  ;;  %1052 = vmatmul.mubr.f32.vlgmr.msra.gmra.mrb[2].mxu1 %v3268_v37  ;;  %v3280_v27 = vmax.f32 %v423_v23, 0.0  ;;  %v735_v23 = vld [vmem:[#allocation6 + $0x990] sm:$0xff] }
 0x1ae   :  { %2231 = vmatpush1.bf16.msra.mxu0 %v2230_v33  ;;  %2359 = vmatpush1.bf16.msra.mxu1 %v2358_v34  ;;  %v2248_v33 = vpack.c.bf16 %v688_v24, %v682_v22  ;;  %v2376_v34 = vpack.c.bf16 %v690_v26, %v684_v25  ;;  %v729_v22 = vld [vmem:[#allocation6 + $0x960] sm:$0xff]  ;;  %v2264_v24 = vpack.c.bf16 %v736_v13, %v730_v12  ;;  %v731_v26 = vld [vmem:[#allocation6 + $0x970] sm:$0xff] }
 0x1af   :  { %2233 = vmatprep.subr.bf16.mxu0 %v2232_v38  ;;  %2361 = vmatprep.subr.bf16.mxu1 %v2360_v39  ;;  %v694_v38 = vld [vmem:[#allocation6 + $0x848] sm:$0xff]  ;;  %v700_v39 = vld [vmem:[#allocation6 + $0x878] sm:$0xff]  ;;  %v783_v12 = vld [vmem:[#allocation6 + $0xb10] sm:$0xff] }
 0x1b0   :  { %980 = vmatprep.mubr.f32.mxu0 %v3280_v27  ;;  %1122 = vmatprep.mubr.f32.mxu1 %v3280_v27 }
 0x1b2   :  { %2235 = vmatpush1.bf16.msra.mxu0 %v2234_v47  ;;  %2363 = vmatpush1.bf16.msra.mxu1 %v2362_v48  ;;  %v2252_v47 = vpack.c.bf16 %v700_v39, %v694_v38  ;;  %v2380_v48 = vpack.c.bf16 %v702_v41, %v696_v40  ;;  %v747_v38 = vld [vmem:[#allocation6 + $0x9f0] sm:$0xff] }
 0x1b3   :  { %2237 = vmatprep.subr.bf16.mxu0 %v2236_v51  ;;  %2365 = vmatprep.subr.bf16.mxu1 %v2364_v52  ;;  %v706_v51 = vld [vmem:[#allocation6 + $0x8a8] sm:$0xff]  ;;  %v712_v52 = vld [vmem:[#allocation6 + $0x8d8] sm:$0xff]  ;;  %v743_v41 = vld [vmem:[#allocation6 + $0x9d0] sm:$0xff] }
 0x1b6   :  { %2239 = vmatpush1.bf16.msra.mxu0 %v2238_v59  ;;  %2367 = vmatpush1.bf16.msra.mxu1 %v2366_v61  ;;  %v2256_v59 = vpack.c.bf16 %v712_v52, %v706_v51  ;;  %v2384_v61 = vpack.c.bf16 %v714_v54, %v708_v53  ;;  %v759_v51 = vld [vmem:[#allocation6 + $0xa50] sm:$0xff] }
 0x1b7   :  { %2241 = vmatprep.subr.bf16.mxu0 %v2240_v0  ;;  %2369 = vmatprep.subr.bf16.mxu1 %v2368_v1  ;;  %v718_v0 = vld [vmem:[#allocation6 + $0x908] sm:$0xff]  ;;  %v724_v1 = vld [vmem:[#allocation6 + $0x938] sm:$0xff]  ;;  %v755_v54 = vld [vmem:[#allocation6 + $0xa30] sm:$0xff] }
 0x1b8   :  { %v2260_v7 = vpack.c.bf16 %v724_v1, %v718_v0  ;;  %v771_v0 = vld [vmem:[#allocation6 + $0xab0] sm:$0xff] }
 0x1ba   :  { %2243 = vmatpush1.bf16.msra.mxu0 %v2242_v9  ;;  %2371 = vmatpush1.bf16.msra.mxu1 %v2370_v10  ;;  %v2388_v9 = vpack.c.bf16 %v726_v3, %v720_v2  ;;  %v719_v10 = vld [vmem:[#allocation6 + $0x910] sm:$0xff] }
 0x1bb   :  { %2245 = vmatprep.subr.bf16.mxu0 %v2244_v18  ;;  %2373 = vmatprep.subr.bf16.mxu1 %v2372_v19  ;;  %v732_v18 = vld [vmem:[#allocation6 + $0x978] sm:$0xff]  ;;  %v738_v19 = vld [vmem:[#allocation6 + $0x9a8] sm:$0xff]  ;;  %v2390_v21 = vpack.c.bf16 %v725_v11, %v719_v10  ;;  %v767_v3 = vld [vmem:[#allocation6 + $0xa90] sm:$0xff] }
 0x1bc   :  { %v2392_v25 = vpack.c.bf16 %v738_v19, %v732_v18  ;;  %v777_v11 = vld [vmem:[#allocation6 + $0xae0] sm:$0xff]  ;;  %v779_v19 = vld [vmem:[#allocation6 + $0xaf0] sm:$0xff] }
 0x1be   :  { %2247 = vmatpush1.bf16.msra.mxu0 %v2246_v28  ;;  %2375 = vmatpush1.bf16.msra.mxu1 %v2374_v29  ;;  %v737_v28 = vld [vmem:[#allocation6 + $0x9a0] sm:$0xff]  ;;  %v742_v29 = vld [vmem:[#allocation6 + $0x9c8] sm:$0xff] }
 0x1bf   :  { %2249 = vmatprep.subr.bf16.mxu0 %v2248_v33  ;;  %2377 = vmatprep.subr.bf16.mxu1 %v2376_v34  ;;  %v750_v33 = vld [vmem:[#allocation6 + $0xa08] sm:$0xff]  ;;  %v2266_v34 = vpack.c.bf16 %v735_v23, %v729_v22  ;;  %v2394_v35 = vpack.c.bf16 %v737_v28, %v731_v26  ;;  %v2268_v39 = vpack.c.bf16 %v748_v30, %v742_v29  ;;  %v796_v22 = vld [vmem:[#allocation6 + $0xb78] sm:$0xff]  ;;  %v789_v29 = vld [vmem:[#allocation6 + $0xb40] sm:$0xff] }
 0x1c0   :  { %v2396_v40 = vpack.c.bf16 %v750_v33, %v744_v31  ;;  %v792_v23 = vld [vmem:[#allocation6 + $0xb58] sm:$0xff]  ;;  %v2282_v26 = vpack.c.bf16 %v783_v12, %v777_v11  ;;  %v795_v30 = vld [vmem:[#allocation6 + $0xb70] sm:$0xff] }
 0x1c1   :  { %v1282_v11 = vld [vmem:[#allocation9 + $0x28] sm:$0xff]  ;;  %v1284_v12 = vld [vmem:[#allocation9 + $0x38] sm:$0xff] }
 0x1c2   :  { %2251 = vmatpush1.bf16.msra.mxu0 %v2250_v42  ;;  %2379 = vmatpush1.bf16.msra.mxu1 %v2378_v43  ;;  %v749_v42 = vld [vmem:[#allocation6 + $0xa00] sm:$0xff]  ;;  %v754_v43 = vld [vmem:[#allocation6 + $0xa28] sm:$0xff] }
 0x1c3   :  { %2253 = vmatprep.subr.bf16.mxu0 %v2252_v47  ;;  %2381 = vmatprep.subr.bf16.mxu1 %v2380_v48  ;;  %v762_v47 = vld [vmem:[#allocation6 + $0xa68] sm:$0xff]  ;;  %v2270_v48 = vpack.c.bf16 %v747_v38, %v741_v36  ;;  %v2398_v49 = vpack.c.bf16 %v749_v42, %v743_v41  ;;  %v2272_v52 = vpack.c.bf16 %v760_v44, %v754_v43  ;;  %v808_v38 = vld [vmem:[#allocation6 + $0xbd8] sm:$0xff]  ;;  %v801_v44 = vld [vmem:[#allocation6 + $0xba0] sm:$0xff] }
 0x1c4   :  { %v2400_v53 = vpack.c.bf16 %v762_v47, %v756_v46  ;;  %v802_v36 = vld [vmem:[#allocation6 + $0xba8] sm:$0xff]  ;;  %v2286_v42 = vpack.c.bf16 %v795_v30, %v789_v29  ;;  %v469_v29 = vld [vmem:[#allocation6 + $0x140] sm:$0xff] }
 0x1c5   :  { %v2288_v46 = vpack.c.bf16 %v808_v38, %v802_v36  ;;  %v1290_v36 = vld [vmem:[#allocation9 + $0x68] sm:$0xff]  ;;  %v1292_v38 = vld [vmem:[#allocation9 + $0x78] sm:$0xff] }
 0x1c6   :  { %2255 = vmatpush1.bf16.msra.mxu0 %v2254_v55  ;;  %2383 = vmatpush1.bf16.msra.mxu1 %v2382_v57  ;;  %v761_v55 = vld [vmem:[#allocation6 + $0xa60] sm:$0xff]  ;;  %v766_v57 = vld [vmem:[#allocation6 + $0xa88] sm:$0xff] }
 0x1c7   :  { %2257 = vmatprep.subr.bf16.mxu0 %v2256_v59  ;;  %2385 = vmatprep.subr.bf16.mxu1 %v2384_v61  ;;  %v774_v59 = vld [vmem:[#allocation6 + $0xac8] sm:$0xff]  ;;  %v2274_v61 = vpack.c.bf16 %v759_v51, %v753_v50  ;;  %v2402_v62 = vpack.c.bf16 %v761_v55, %v755_v54  ;;  %v2276_v1 = vpack.c.bf16 %v772_v45, %v766_v57  ;;  %v809_v50 = vld [vmem:[#allocation6 + $0xbe0] sm:$0xff]  ;;  %v439_v45 = vld [vmem:[#allocation6 + $0x50] sm:$0xff] }
 0x1c8   :  { %v2404_v2 = vpack.c.bf16 %v774_v59, %v768_v58  ;;  %v434_v51 = vld [vmem:[#allocation6 + $0x28] sm:$0xff]  ;;  %v433_v57 = vld [vmem:[#allocation6 + $0x20] sm:$0xff]  ;;  %v452_v59 = vld [vmem:[#allocation6 + $0xb8] sm:$0xff] }
 0x1c9   :  { %v446_v58 = vld [vmem:[#allocation6 + $0x88] sm:$0xff] }
 0x1ca   :  { %2259 = vmatpush1.bf16.msra.mxu0 %v2258_v4  ;;  %2387 = vmatpush1.bf16.msra.mxu1 %v2386_v5  ;;  %v773_v4 = vld [vmem:[#allocation6 + $0xac0] sm:$0xff]  ;;  %v778_v5 = vld [vmem:[#allocation6 + $0xae8] sm:$0xff] }
 0x1cb   :  { %2261 = vmatprep.subr.bf16.mxu0 %v2260_v7  ;;  %2389 = vmatprep.subr.bf16.mxu1 %v2388_v9  ;;  %v786_v7 = vld [vmem:[#allocation6 + $0xb28] sm:$0xff]  ;;  %v2278_v9 = vpack.c.bf16 %v771_v0, %v765_v63  ;;  %v2406_v10 = vpack.c.bf16 %v773_v4, %v767_v3  ;;  %v2280_v13 = vpack.c.bf16 %v784_v60, %v778_v5  ;;  %v445_v0 = vld [vmem:[#allocation6 + $0x80] sm:$0xff]  ;;  %v463_v4 = vld [vmem:[#allocation6 + $0x110] sm:$0xff] }
 0x1cc   :  { %v2408_v18 = vpack.c.bf16 %v786_v7, %v780_v6  ;;  %v2424_v63 = vpack.c.bf16 %v452_v59, %v446_v58  ;;  %v457_v3 = vld [vmem:[#allocation6 + $0xe0] sm:$0xff]  ;;  %v1278_v5 = vld [vmem:[#allocation9 + $0x8] sm:$0xff]  ;;  %v1295_v58 = vld [vmem:[#allocation9 + $0x90] sm:$0xff] }
 0x1cd   :  { %v1280_v60 = vld [vmem:[#allocation9 + $0x18] sm:$0xff]  ;;  %v1277_v6 = vld [vmem:[#allocation9] sm:$0xff] }
 0x1ce   :  { %2263 = vmatpush1.bf16.msra.mxu0 %v2262_v20  ;;  %2391 = vmatpush1.bf16.msra.mxu1 %v2390_v21  ;;  %v785_v20 = vld [vmem:[#allocation6 + $0xb20] sm:$0xff]  ;;  %v790_v21 = vld [vmem:[#allocation6 + $0xb48] sm:$0xff] }
 0x1cf   :  { %2265 = vmatprep.subr.bf16.mxu0 %v2264_v24  ;;  %2393 = vmatprep.subr.bf16.mxu1 %v2392_v25  ;;  %v798_v24 = vld [vmem:[#allocation6 + $0xb88] sm:$0xff]  ;;  %v256_v25 = vsub.s32 2, %v3252_v14  ;;  %v2410_v28 = vpack.c.bf16 %v785_v20, %v779_v19  ;;  %v2284_v31 = vpack.c.bf16 %v796_v22, %v790_v21  ;;  %v2552_v19 = vpack.c.bf16 %v1284_v12, %v1282_v11  ;;  %v1283_v21 = vld [vmem:[#allocation9 + $0x30] sm:$0xff]  ;;  %v1304_v11 = vld [vmem:[#allocation9 + $0xd8] sm:$0xff] }
 0x1d0   :  { %v2412_v33 = vpack.c.bf16 %v798_v24, %v792_v23  ;;  %v1281_v20 = vld [vmem:[#allocation9 + $0x20] sm:$0xff]  ;;  %v1286_v22 = vld [vmem:[#allocation9 + $0x48] sm:$0xff]  ;;  %v476_v24 = vld [vmem:[#allocation6 + $0x178] sm:$0xff] }
 0x1d1   :  { %v257_v41 = vrot.slane %v3257_v16, %v256_v25  ;;  %v470_v23 = vld [vmem:[#allocation6 + $0x148] sm:$0xff] }
 0x1d2   :  { %2267 = vmatpush1.bf16.msra.mxu0 %v2266_v34  ;;  %2395 = vmatpush1.bf16.msra.mxu1 %v2394_v35  ;;  %v791_v34 = vld [vmem:[#allocation6 + $0xb50] sm:$0xff]  ;;  %v797_v35 = vld [vmem:[#allocation6 + $0xb80] sm:$0xff]  ;;  %v518_v12 = vld [vmem:[#allocation6 + $0x2c8] sm:$0xff] }
 0x1d3   :  { %2269 = vmatprep.subr.bf16.mxu0 %v2268_v39  ;;  %2397 = vmatprep.subr.bf16.mxu1 %v2396_v40  ;;  %v804_v39 = vld [vmem:[#allocation6 + $0xbb8] sm:$0xff]  ;;  %v810_v40 = vld [vmem:[#allocation6 + $0xbe8] sm:$0xff]  ;;  %v2414_v43 = vpack.c.bf16 %v797_v35, %v791_v34  ;;  %v2432_v34 = vpack.c.bf16 %v476_v24, %v470_v23  ;;  %v475_v35 = vld [vmem:[#allocation6 + $0x170] sm:$0xff] }
 0x1d4   :  { %v2416_v47 = vpack.c.bf16 %v810_v40, %v804_v39  ;;  %v482_v39 = vld [vmem:[#allocation6 + $0x1a8] sm:$0xff]  ;;  %v488_v40 = vld [vmem:[#allocation6 + $0x1d8] sm:$0xff] }
 0x1d5   :  { %v1303_v23 = vld [vmem:[#allocation9 + $0xd0] sm:$0xff] }
 0x1d6   :  { %2271 = vmatpush1.bf16.msra.mxu0 %v2270_v48  ;;  %2399 = vmatpush1.bf16.msra.mxu1 %v2398_v49  ;;  %v807_v48 = vld [vmem:[#allocation6 + $0xbd0] sm:$0xff] }
 0x1d7   :  { %2273 = vmatprep.subr.bf16.mxu0 %v2272_v52  ;;  %2401 = vmatprep.subr.bf16.mxu1 %v2400_v53  ;;  %v803_v49 = vld [vmem:[#allocation6 + $0xbb0] sm:$0xff]  ;;  %v440_v52 = vld [vmem:[#allocation6 + $0x58] sm:$0xff]  ;;  %v421_v53 = vadd.f32 %v3278_v8, %v257_v41  ;;  %v2290_v54 = vpack.c.bf16 %v807_v48, %v801_v44  ;;  %v2560_v44 = vpack.c.bf16 %v1292_v38, %v1290_v36  ;;  %v1305_v36 = vld [vmem:[#allocation9 + $0xe0] sm:$0xff] }
 0x1d8   :  { %v2418_v16 = vpack.c.bf16 %v809_v50, %v803_v49  ;;  %v2420_v55 = vpack.c.bf16 %v440_v52, %v434_v51  ;;  %v451_v8 = vld [vmem:[#allocation6 + $0xb0] sm:$0xff]  ;;  %v2436_v48 = vpack.c.bf16 %v488_v40, %v482_v39  ;;  %v1296_v51 = vld [vmem:[#allocation9 + $0x98] sm:$0xff]  ;;  %v494_v52 = vld [vmem:[#allocation6 + $0x208] sm:$0xff] }
 0x1d9   :  { %v2426_v7 = vpack.c.bf16 %v451_v8, %v445_v0  ;;  %v487_v49 = vld [vmem:[#allocation6 + $0x1d0] sm:$0xff]  ;;  %v1300_v0 = vld [vmem:[#allocation9 + $0xb8] sm:$0xff]  ;;  %v506_v8 = vld [vmem:[#allocation6 + $0x268] sm:$0xff] }
 0x1da   :  { %2275 = vmatpush1.bf16.msra.mxu0 %v2274_v61  ;;  %2403 = vmatpush1.bf16.msra.mxu1 %v2402_v62  ;;  %v3289_v61 = vmax.f32 %v421_v53, 0.0  ;;  %v2422_v62 = vpack.c.bf16 %v439_v45, %v433_v57  ;;  %v1294_v50 = vld [vmem:[#allocation9 + $0x88] sm:$0xff]  ;;  %v500_v53 = vld [vmem:[#allocation6 + $0x238] sm:$0xff]  ;;  %v1293_v45 = vld [vmem:[#allocation9 + $0x80] sm:$0xff] }
 0x1db   :  { %2277 = vmatprep.subr.bf16.mxu0 %v2276_v1  ;;  %2405 = vmatprep.subr.bf16.mxu1 %v2404_v2  ;;  %v458_v1 = vld [vmem:[#allocation6 + $0xe8] sm:$0xff]  ;;  %v464_v2 = vld [vmem:[#allocation6 + $0x118] sm:$0xff]  ;;  %v2564_v57 = vpack.c.bf16 %v1296_v51, %v1294_v50  ;;  %v2440_v59 = vpack.c.bf16 %v500_v53, %v494_v52  ;;  %v535_v40 = vld [vmem:[#allocation6 + $0x350] sm:$0xff] }
 0x1dc   :  { %v1307_v38 = vld [vmem:[#allocation9 + $0xf0] sm:$0xff]  ;;  %v1309_v50 = vld [vmem:[#allocation9 + $0x100] sm:$0xff] }
 0x1dd   :  { %v1311_v51 = vld [vmem:[#allocation9 + $0x110] sm:$0xff] }
 0x1de   :  { %2279 = vmatpush1.bf16.msra.mxu0 %v2278_v9  ;;  %2407 = vmatpush1.bf16.msra.mxu1 %v2406_v10  ;;  %v2548_v9 = vpack.c.bf16 %v1280_v60, %v1278_v5  ;;  %v1279_v10 = vld [vmem:[#allocation9 + $0x10] sm:$0xff]  ;;  %v1297_v60 = vld [vmem:[#allocation9 + $0xa0] sm:$0xff] }
 0x1df   :  { %2281 = vmatprep.subr.bf16.mxu0 %v2280_v13  ;;  %2409 = vmatprep.subr.bf16.mxu1 %v2408_v18  ;;  %v2428_v13 = vpack.c.bf16 %v464_v2, %v458_v1  ;;  %v2550_v18 = vpack.c.bf16 %v1279_v10, %v1277_v6  ;;  %v512_v1 = vld [vmem:[#allocation6 + $0x298] sm:$0xff]  ;;  %v2566_v2 = vpack.c.bf16 %v1295_v58, %v1293_v45  ;;  %v1302_v10 = vld [vmem:[#allocation9 + $0xc8] sm:$0xff] }
 0x1e0   :  { %v1299_v6 = vld [vmem:[#allocation9 + $0xb0] sm:$0xff]  ;;  %v2582_v45 = vpack.c.bf16 %v1311_v51, %v1309_v50 }
 0x1e1   :  { %v547_v53 = vld [vmem:[#allocation6 + $0x3b0] sm:$0xff] }
 0x1e2   :  { %2283 = vmatpush1.bf16.msra.mxu0 %v2282_v26  ;;  %2411 = vmatpush1.bf16.msra.mxu1 %v2410_v28  ;;  %v1288_v26 = vld [vmem:[#allocation9 + $0x58] sm:$0xff]  ;;  %v2554_v28 = vpack.c.bf16 %v1283_v21, %v1281_v20  ;;  %v2572_v21 = vpack.c.bf16 %v1304_v11, %v1302_v10  ;;  %v1317_v10 = vld [vmem:[#allocation9 + $0x140] sm:$0xff]  ;;  %v1319_v11 = vld [vmem:[#allocation9 + $0x150] sm:$0xff] }
 0x1e3   :  { %2285 = vmatprep.subr.bf16.mxu0 %v2284_v31  ;;  %2413 = vmatprep.subr.bf16.mxu1 %v2412_v33  ;;  %v2556_v30 = vpack.c.bf16 %v1288_v26, %v1286_v22  ;;  %v1285_v31 = vld [vmem:[#allocation9 + $0x40] sm:$0xff]  ;;  %v1287_v33 = vld [vmem:[#allocation9 + $0x50] sm:$0xff] }
 0x1e4   :  { %v2558_v41 = vpack.c.bf16 %v1287_v33, %v1285_v31  ;;  %v517_v20 = vld [vmem:[#allocation6 + $0x2c0] sm:$0xff]  ;;  %v523_v26 = vld [vmem:[#allocation6 + $0x2f0] sm:$0xff] }
 0x1e5   :  { %v1301_v22 = vld [vmem:[#allocation9 + $0xc0] sm:$0xff]  ;;  %v2450_v33 = vpack.c.bf16 %v523_v26, %v517_v20 }
 0x1e6   :  { %2287 = vmatpush1.bf16.msra.mxu0 %v2286_v42  ;;  %2415 = vmatpush1.bf16.msra.mxu1 %v2414_v43  ;;  %v2434_v42 = vpack.c.bf16 %v475_v35, %v469_v29  ;;  %v481_v43 = vld [vmem:[#allocation6 + $0x1a0] sm:$0xff]  ;;  %v530_v29 = vld [vmem:[#allocation6 + $0x328] sm:$0xff]  ;;  %v2574_v31 = vpack.c.bf16 %v1303_v23, %v1301_v22  ;;  %v2590_v22 = vpack.c.bf16 %v1319_v11, %v1317_v10 }
 0x1e7   :  { %2289 = vmatprep.subr.bf16.mxu0 %v2288_v46  ;;  %2417 = vmatprep.subr.bf16.mxu1 %v2416_v47  ;;  %v1289_v46 = vld [vmem:[#allocation9 + $0x60] sm:$0xff]  ;;  %v1291_v47 = vld [vmem:[#allocation9 + $0x70] sm:$0xff] }
 0x1e8   :  { %v578_v20 = vld [vmem:[#allocation6 + $0x4a8] sm:$0xff]  ;;  %v625_v11 = vld [vmem:[#allocation6 + $0x620] sm:$0xff] }
 0x1ea   :  { %2291 = vmatpush1.bf16.msra.mxu0 %v2290_v54  ;;  %2419 = vmatpush1.bf16.msra.mxu1 %v2418_v16  ;;  %v2562_v54 = vpack.c.bf16 %v1291_v47, %v1289_v46  ;;  %v2438_v16 = vpack.c.bf16 %v487_v49, %v481_v43  ;;  %v542_v43 = vld [vmem:[#allocation6 + $0x388] sm:$0xff]  ;;  %v2578_v46 = vpack.c.bf16 %v1307_v38, %v1305_v36 }
 0x1eb   :  { %2421 = vmatprep.subr.bf16.mxu0 %v2420_v55  ;;  %2549 = vmatprep.subr.bf16.mxu1 %v2548_v9  ;;  %v493_v55 = vld [vmem:[#allocation6 + $0x200] sm:$0xff]  ;;  %v511_v9 = vld [vmem:[#allocation6 + $0x290] sm:$0xff] }
 0x1ed   :  { %981 = vmatmul.mubr.f32.vlgmr.msra.gmra.mrb[2].mxu0 %v3289_v61  ;;  %1123 = vmatmul.mubr.f32.vlgmr.msra.gmra.mrb[2].mxu1 %v3289_v61 }
 0x1ee   :  { %2423 = vmatpush1.bf16.msra.mxu0 %v2422_v62  ;;  %1193 = vmatprep.mubr.f32.mxu0 %v3266_v32  ;;  %v2430_v32 = vpack.c.bf16 %v463_v4, %v457_v3  ;;  %v499_v62 = vld [vmem:[#allocation6 + $0x230] sm:$0xff]  ;;  %v505_v4 = vld [vmem:[#allocation6 + $0x260] sm:$0xff] }
 0x1ef   :  { %2425 = vmatprep.subr.bf16.mxu0 %v2424_v63  ;;  %2551 = vmatpush1.bf16.msra.mxu1 %v2550_v18  ;;  %v1298_v63 = vld [vmem:[#allocation9 + $0xa8] sm:$0xff]  ;;  %v2442_v3 = vpack.c.bf16 %v499_v62, %v493_v55  ;;  %v2570_v18 = vpack.c.bf16 %v1299_v6, %v1297_v60 }
 0x1f0   :  { %2553 = vmatprep.subr.bf16.mxu1 %v2552_v19  ;;  %v2568_v5 = vpack.c.bf16 %v1300_v0, %v1298_v63  ;;  %v2446_v19 = vpack.c.bf16 %v511_v9, %v505_v4  ;;  %v554_v55 = vld [vmem:[#allocation6 + $0x3e8] sm:$0xff]  ;;  %v1315_v0 = vld [vmem:[#allocation9 + $0x130] sm:$0xff] }
 0x1f1   :  { %v1313_v63 = vld [vmem:[#allocation9 + $0x120] sm:$0xff] }
 0x1f2   :  { %2427 = vmatpush1.bf16.msra.mxu0 %v2426_v7  ;;  %v2444_v7 = vpack.c.bf16 %v512_v1, %v506_v8  ;;  %v559_v1 = vld [vmem:[#allocation6 + $0x410] sm:$0xff]  ;;  %v566_v4 = vld [vmem:[#allocation6 + $0x448] sm:$0xff]  ;;  %v2586_v60 = vpack.c.bf16 %v1315_v0, %v1313_v63 }
 0x1f3   :  { %2429 = vmatprep.subr.bf16.mxu0 %v2428_v13  ;;  %2555 = vmatpush1.bf16.msra.mxu1 %v2554_v28  ;;  %v524_v13 = vld [vmem:[#allocation6 + $0x2f8] sm:$0xff]  ;;  %v1306_v28 = vld [vmem:[#allocation9 + $0xe8] sm:$0xff] }
 0x1f4   :  { %2557 = vmatprep.subr.bf16.mxu1 %v2556_v30  ;;  %v2448_v24 = vpack.c.bf16 %v524_v13, %v518_v12  ;;  %v536_v30 = vld [vmem:[#allocation6 + $0x358] sm:$0xff]  ;;  %v571_v13 = vld [vmem:[#allocation6 + $0x470] sm:$0xff] }
 0x1f5   :  { %v2452_v39 = vpack.c.bf16 %v536_v30, %v530_v29  ;;  %v583_v30 = vld [vmem:[#allocation6 + $0x4d0] sm:$0xff] }
 0x1f6   :  { %2431 = vmatpush1.bf16.msra.mxu0 %v2430_v32  ;;  %v1308_v32 = vld [vmem:[#allocation9 + $0xf8] sm:$0xff] }
 0x1f7   :  { %2433 = vmatprep.subr.bf16.mxu0 %v2432_v34  ;;  %2559 = vmatpush1.bf16.msra.mxu1 %v2558_v41  ;;  %v529_v34 = vld [vmem:[#allocation6 + $0x320] sm:$0xff]  ;;  %v2576_v35 = vpack.c.bf16 %v1308_v32, %v1306_v28  ;;  %v1310_v41 = vld [vmem:[#allocation9 + $0x108] sm:$0xff]  ;;  %v1323_v32 = vld [vmem:[#allocation9 + $0x170] sm:$0xff] }
 0x1f8   :  { %2561 = vmatprep.subr.bf16.mxu1 %v2560_v44  ;;  %v548_v44 = vld [vmem:[#allocation6 + $0x3b8] sm:$0xff]  ;;  %v2454_v47 = vpack.c.bf16 %v535_v40, %v529_v34  ;;  %v1321_v28 = vld [vmem:[#allocation9 + $0x160] sm:$0xff] }
 0x1f9   :  { %v2456_v52 = vpack.c.bf16 %v548_v44, %v542_v43  ;;  %v590_v34 = vld [vmem:[#allocation6 + $0x508] sm:$0xff]  ;;  %v2594_v36 = vpack.c.bf16 %v1323_v32, %v1321_v28  ;;  %v595_v44 = vld [vmem:[#allocation6 + $0x530] sm:$0xff]  ;;  %v649_v32 = vld [vmem:[#allocation6 + $0x6e0] sm:$0xff] }
 0x1fa   :  { %2435 = vmatpush1.bf16.msra.mxu0 %v2434_v42  ;;  %v1312_v42 = vld [vmem:[#allocation9 + $0x118] sm:$0xff] }
 0x1fb   :  { %2437 = vmatprep.subr.bf16.mxu0 %v2436_v48  ;;  %2563 = vmatpush1.bf16.msra.mxu1 %v2562_v54  ;;  %v541_v48 = vld [vmem:[#allocation6 + $0x380] sm:$0xff]  ;;  %v2580_v49 = vpack.c.bf16 %v1312_v42, %v1310_v41  ;;  %v1314_v54 = vld [vmem:[#allocation9 + $0x128] sm:$0xff]  ;;  %v1327_v42 = vld [vmem:[#allocation9 + $0x190] sm:$0xff] }
 0x1fc   :  { %2565 = vmatprep.subr.bf16.mxu1 %v2564_v57  ;;  %v560_v57 = vld [vmem:[#allocation6 + $0x418] sm:$0xff]  ;;  %v2458_v58 = vpack.c.bf16 %v547_v53, %v541_v48  ;;  %v1325_v41 = vld [vmem:[#allocation9 + $0x180] sm:$0xff] }
 0x1fd   :  { %v2460_v8 = vpack.c.bf16 %v560_v57, %v554_v55  ;;  %v602_v48 = vld [vmem:[#allocation6 + $0x568] sm:$0xff]  ;;  %v2598_v50 = vpack.c.bf16 %v1327_v42, %v1325_v41  ;;  %v607_v57 = vld [vmem:[#allocation6 + $0x590] sm:$0xff] }
 0x1fe   :  { %2439 = vmatpush1.bf16.msra.mxu0 %v2438_v16  ;;  %v1316_v16 = vld [vmem:[#allocation9 + $0x138] sm:$0xff]  ;;  %v679_v41 = vld [vmem:[#allocation6 + $0x7d0] sm:$0xff]  ;;  %v686_v42 = vld [vmem:[#allocation6 + $0x808] sm:$0xff] }
 0x1ff   :  { %2441 = vmatprep.subr.bf16.mxu0 %v2440_v59  ;;  %2567 = vmatpush1.bf16.msra.mxu1 %v2566_v2  ;;  %v553_v59 = vld [vmem:[#allocation6 + $0x3e0] sm:$0xff]  ;;  %v2584_v62 = vpack.c.bf16 %v1316_v16, %v1314_v54  ;;  %v1318_v2 = vld [vmem:[#allocation9 + $0x148] sm:$0xff]  ;;  %v1331_v16 = vld [vmem:[#allocation9 + $0x1b0] sm:$0xff] }
 0x200   :  { %2569 = vmatprep.subr.bf16.mxu1 %v2568_v5  ;;  %v572_v5 = vld [vmem:[#allocation6 + $0x478] sm:$0xff]  ;;  %v2462_v6 = vpack.c.bf16 %v559_v1, %v553_v59  ;;  %v1329_v54 = vld [vmem:[#allocation9 + $0x1a0] sm:$0xff] }
 0x201   :  { %v2464_v12 = vpack.c.bf16 %v572_v5, %v566_v4  ;;  %v614_v59 = vld [vmem:[#allocation6 + $0x5c8] sm:$0xff]  ;;  %v2602_v63 = vpack.c.bf16 %v1331_v16, %v1329_v54  ;;  %v613_v4 = vld [vmem:[#allocation6 + $0x5c0] sm:$0xff]  ;;  %v619_v5 = vld [vmem:[#allocation6 + $0x5f0] sm:$0xff] }
 0x202   :  { %2443 = vmatpush1.bf16.msra.mxu0 %v2442_v3  ;;  %v1320_v3 = vld [vmem:[#allocation9 + $0x158] sm:$0xff]  ;;  %v1333_v1 = vld [vmem:[#allocation9 + $0x1c0] sm:$0xff] }
 0x203   :  { %2445 = vmatprep.subr.bf16.mxu0 %v2444_v7  ;;  %2571 = vmatpush1.bf16.msra.mxu1 %v2570_v18  ;;  %v565_v7 = vld [vmem:[#allocation6 + $0x440] sm:$0xff]  ;;  %v2588_v9 = vpack.c.bf16 %v1320_v3, %v1318_v2  ;;  %v1322_v18 = vld [vmem:[#allocation9 + $0x168] sm:$0xff]  ;;  %v1335_v2 = vld [vmem:[#allocation9 + $0x1d0] sm:$0xff] }
 0x204   :  { %2573 = vmatprep.subr.bf16.mxu1 %v2572_v21  ;;  %v584_v21 = vld [vmem:[#allocation6 + $0x4d8] sm:$0xff]  ;;  %v2466_v23 = vpack.c.bf16 %v571_v13, %v565_v7  ;;  %v2606_v7 = vpack.c.bf16 %v1335_v2, %v1333_v1  ;;  %v638_v13 = vld [vmem:[#allocation6 + $0x688] sm:$0xff]  ;;  %v715_v2 = vld [vmem:[#allocation6 + $0x8f0] sm:$0xff] }
 0x205   :  { %v2468_v29 = vpack.c.bf16 %v584_v21, %v578_v20  ;;  %v637_v21 = vld [vmem:[#allocation6 + $0x680] sm:$0xff]  ;;  %v710_v16 = vld [vmem:[#allocation6 + $0x8c8] sm:$0xff] }
 0x206   :  { %2447 = vmatpush1.bf16.msra.mxu0 %v2446_v19  ;;  %v1324_v19 = vld [vmem:[#allocation9 + $0x178] sm:$0xff] }
 0x207   :  { %2449 = vmatprep.subr.bf16.mxu0 %v2448_v24  ;;  %2575 = vmatpush1.bf16.msra.mxu1 %v2574_v31  ;;  %v577_v24 = vld [vmem:[#allocation6 + $0x4a0] sm:$0xff]  ;;  %v2592_v26 = vpack.c.bf16 %v1324_v19, %v1322_v18  ;;  %v1326_v31 = vld [vmem:[#allocation9 + $0x188] sm:$0xff]  ;;  %v644_v18 = vld [vmem:[#allocation6 + $0x6b8] sm:$0xff] }
 0x208   :  { %2577 = vmatprep.subr.bf16.mxu1 %v2576_v35  ;;  %v596_v35 = vld [vmem:[#allocation6 + $0x538] sm:$0xff]  ;;  %v2470_v38 = vpack.c.bf16 %v583_v30, %v577_v24  ;;  %v2488_v20 = vpack.c.bf16 %v644_v18, %v638_v13  ;;  %v662_v30 = vld [vmem:[#allocation6 + $0x748] sm:$0xff] }
 0x209   :  { %v2472_v43 = vpack.c.bf16 %v596_v35, %v590_v34  ;;  %v656_v24 = vld [vmem:[#allocation6 + $0x718] sm:$0xff]  ;;  %v661_v35 = vld [vmem:[#allocation6 + $0x740] sm:$0xff] }
 0x20a   :  { %2451 = vmatpush1.bf16.msra.mxu0 %v2450_v33  ;;  %v1328_v33 = vld [vmem:[#allocation9 + $0x198] sm:$0xff] }
 0x20b   :  { %2453 = vmatprep.subr.bf16.mxu0 %v2452_v39  ;;  %2579 = vmatpush1.bf16.msra.mxu1 %v2578_v46  ;;  %v589_v39 = vld [vmem:[#allocation6 + $0x500] sm:$0xff]  ;;  %v2596_v40 = vpack.c.bf16 %v1328_v33, %v1326_v31  ;;  %v1330_v46 = vld [vmem:[#allocation9 + $0x1a8] sm:$0xff]  ;;  %v668_v31 = vld [vmem:[#allocation6 + $0x778] sm:$0xff] }
 0x20c   :  { %2581 = vmatprep.subr.bf16.mxu1 %v2580_v49  ;;  %v608_v49 = vld [vmem:[#allocation6 + $0x598] sm:$0xff]  ;;  %v2474_v51 = vpack.c.bf16 %v595_v44, %v589_v39  ;;  %v2496_v34 = vpack.c.bf16 %v668_v31, %v662_v30 }
 0x20d   :  { %v2476_v55 = vpack.c.bf16 %v608_v49, %v602_v48  ;;  %v680_v39 = vld [vmem:[#allocation6 + $0x7d8] sm:$0xff]  ;;  %v691_v48 = vld [vmem:[#allocation6 + $0x830] sm:$0xff]  ;;  %v698_v49 = vld [vmem:[#allocation6 + $0x868] sm:$0xff] }
 0x20e   :  { %2455 = vmatpush1.bf16.msra.mxu0 %v2454_v47  ;;  %v1332_v47 = vld [vmem:[#allocation9 + $0x1b8] sm:$0xff] }
 0x20f   :  { %2457 = vmatprep.subr.bf16.mxu0 %v2456_v52  ;;  %2583 = vmatpush1.bf16.msra.mxu1 %v2582_v45  ;;  %v601_v52 = vld [vmem:[#allocation6 + $0x560] sm:$0xff]  ;;  %v2600_v53 = vpack.c.bf16 %v1332_v47, %v1330_v46  ;;  %v1334_v45 = vld [vmem:[#allocation9 + $0x1c8] sm:$0xff]  ;;  %v740_v13 = vld [vmem:[#allocation6 + $0x9b8] sm:$0xff] }
 0x210   :  { %2585 = vmatprep.subr.bf16.mxu1 %v2584_v62  ;;  %v620_v62 = vld [vmem:[#allocation6 + $0x5f8] sm:$0xff]  ;;  %v2478_v0 = vpack.c.bf16 %v607_v57, %v601_v52  ;;  %v685_v47 = vld [vmem:[#allocation6 + $0x800] sm:$0xff] }
 0x211   :  { %v2480_v3 = vpack.c.bf16 %v620_v62, %v614_v59  ;;  %v697_v52 = vld [vmem:[#allocation6 + $0x860] sm:$0xff]  ;;  %v1339_v62 = vld [vmem:[#allocation9 + $0x1f0] sm:$0xff] }
 0x212   :  { %2459 = vmatpush1.bf16.msra.mxu0 %v2458_v58  ;;  %v1336_v58 = vld [vmem:[#allocation9 + $0x1d8] sm:$0xff]  ;;  %v1337_v59 = vld [vmem:[#allocation9 + $0x1e0] sm:$0xff] }
 0x213   :  { %2461 = vmatprep.subr.bf16.mxu0 %v2460_v8  ;;  %2587 = vmatpush1.bf16.msra.mxu1 %v2586_v60  ;;  %v2604_v8 = vpack.c.bf16 %v1336_v58, %v1334_v45  ;;  %v626_v60 = vld [vmem:[#allocation6 + $0x628] sm:$0xff]  ;;  %v1340_v57 = vld [vmem:[#allocation9 + $0x1f8] sm:$0xff] }
 0x214   :  { %2589 = vmatprep.subr.bf16.mxu1 %v2588_v9  ;;  %v2482_v9 = vpack.c.bf16 %v619_v5, %v613_v4  ;;  %v716_v45 = vld [vmem:[#allocation6 + $0x8f8] sm:$0xff]  ;;  %v722_v5 = vld [vmem:[#allocation6 + $0x928] sm:$0xff] }
 0x215   :  { %v2512_v1 = vpack.c.bf16 %v716_v45, %v710_v16  ;;  %v1344_v4 = vld [vmem:[#allocation9 + $0x218] sm:$0xff] }
 0x216   :  { %2463 = vmatpush1.bf16.msra.mxu0 %v2462_v6  ;;  %v632_v6 = vld [vmem:[#allocation6 + $0x658] sm:$0xff]  ;;  %v805_v45 = vld [vmem:[#allocation6 + $0xbc0] sm:$0xff] }
 0x217   :  { %2465 = vmatprep.subr.bf16.mxu0 %v2464_v12  ;;  %2591 = vmatpush1.bf16.msra.mxu1 %v2590_v22  ;;  %v2484_v10 = vpack.c.bf16 %v632_v6, %v626_v60  ;;  %v631_v12 = vld [vmem:[#allocation6 + $0x650] sm:$0xff]  ;;  %v728_v60 = vld [vmem:[#allocation6 + $0x958] sm:$0xff] }
 0x218   :  { %2593 = vmatprep.subr.bf16.mxu1 %v2592_v26  ;;  %v2486_v19 = vpack.c.bf16 %v631_v12, %v625_v11  ;;  %v643_v22 = vld [vmem:[#allocation6 + $0x6b0] sm:$0xff]  ;;  %v734_v12 = vld [vmem:[#allocation6 + $0x988] sm:$0xff]  ;;  %v764_v30 = vld [vmem:[#allocation6 + $0xa78] sm:$0xff] }
 0x219   :  { %v2490_v26 = vpack.c.bf16 %v643_v22, %v637_v21  ;;  %v727_v11 = vld [vmem:[#allocation6 + $0x950] sm:$0xff]  ;;  %v746_v22 = vld [vmem:[#allocation6 + $0x9e8] sm:$0xff]  ;;  %v812_v16 = vld [vmem:[#allocation6 + $0xbf8] sm:$0xff] }
 0x21a   :  { %2467 = vmatpush1.bf16.msra.mxu0 %v2466_v23  ;;  %v650_v23 = vld [vmem:[#allocation6 + $0x6e8] sm:$0xff]  ;;  %v739_v21 = vld [vmem:[#allocation6 + $0x9b0] sm:$0xff] }
 0x21b   :  { %2469 = vmatprep.subr.bf16.mxu0 %v2468_v29  ;;  %2595 = vmatpush1.bf16.msra.mxu1 %v2594_v36  ;;  %v2492_v28 = vpack.c.bf16 %v656_v24, %v650_v23  ;;  %v655_v29 = vld [vmem:[#allocation6 + $0x710] sm:$0xff]  ;;  %v752_v23 = vld [vmem:[#allocation6 + $0xa18] sm:$0xff] }
 0x21c   :  { %2597 = vmatprep.subr.bf16.mxu1 %v2596_v40  ;;  %v2494_v33 = vpack.c.bf16 %v655_v29, %v649_v32  ;;  %v667_v36 = vld [vmem:[#allocation6 + $0x770] sm:$0xff]  ;;  %v758_v29 = vld [vmem:[#allocation6 + $0xa48] sm:$0xff] }
 0x21d   :  { %v751_v32 = vld [vmem:[#allocation6 + $0xa10] sm:$0xff] }
 0x21e   :  { %2471 = vmatpush1.bf16.msra.mxu0 %v2470_v38  ;;  %v674_v38 = vld [vmem:[#allocation6 + $0x7a8] sm:$0xff] }
 0x21f   :  { %2473 = vmatprep.subr.bf16.mxu0 %v2472_v43  ;;  %2599 = vmatpush1.bf16.msra.mxu1 %v2598_v50  ;;  %v2500_v40 = vpack.c.bf16 %v680_v39, %v674_v38  ;;  %v692_v43 = vld [vmem:[#allocation6 + $0x838] sm:$0xff] }
 0x220   :  { %2601 = vmatprep.subr.bf16.mxu1 %v2600_v53  ;;  %v2504_v46 = vpack.c.bf16 %v692_v43, %v686_v42  ;;  %v704_v50 = vld [vmem:[#allocation6 + $0x898] sm:$0xff]  ;;  %v703_v53 = vld [vmem:[#allocation6 + $0x890] sm:$0xff] }
 0x221   :  { %v2508_v54 = vpack.c.bf16 %v704_v50, %v698_v49  ;;  %v776_v38 = vld [vmem:[#allocation6 + $0xad8] sm:$0xff] }
 0x222   :  { %2475 = vmatpush1.bf16.msra.mxu0 %v2474_v51  ;;  %v2506_v51 = vpack.c.bf16 %v691_v48, %v685_v47  ;;  %v788_v42 = vld [vmem:[#allocation6 + $0xb38] sm:$0xff]  ;;  %v787_v47 = vld [vmem:[#allocation6 + $0xb30] sm:$0xff]  ;;  %v794_v48 = vld [vmem:[#allocation6 + $0xb68] sm:$0xff] }
 0x223   :  { %2477 = vmatprep.subr.bf16.mxu0 %v2476_v55  ;;  %2603 = vmatpush1.bf16.msra.mxu1 %v2602_v63  ;;  %v1338_v55 = vld [vmem:[#allocation9 + $0x1e8] sm:$0xff]  ;;  %v2610_v63 = vpack.c.bf16 %v1339_v62, %v1337_v59  ;;  %v800_v49 = vld [vmem:[#allocation6 + $0xb98] sm:$0xff]  ;;  %v3297_v62 = vld [vmem:[#allocation7] sm:$0x3f] }
 0x224   :  { %2605 = vmatprep.subr.bf16.mxu1 %v2604_v8  ;;  %v2608_v58 = vpack.c.bf16 %v1340_v57, %v1338_v55  ;;  %v709_v8 = vld [vmem:[#allocation6 + $0x8c0] sm:$0xff] }
 0x226   :  { %2479 = vmatpush1.bf16.msra.mxu0 %v2478_v0  ;;  %v2510_v0 = vpack.c.bf16 %v703_v53, %v697_v52  ;;  %v793_v52 = vld [vmem:[#allocation6 + $0xb60] sm:$0xff]  ;;  %v799_v53 = vld [vmem:[#allocation6 + $0xb90] sm:$0xff] }
 0x227   :  { %2481 = vmatprep.subr.bf16.mxu0 %v2480_v3  ;;  %2607 = vmatpush1.bf16.msra.mxu1 %v2606_v7  ;;  %v1342_v3 = vld [vmem:[#allocation9 + $0x208] sm:$0xff]  ;;  %v2514_v7 = vpack.c.bf16 %v715_v2, %v709_v8  ;;  %v2542_v55 = vpack.c.bf16 %v799_v53, %v793_v52  ;;  %v830_v8 = vrot.slane %v3297_v62, %v260_v56 }
 0x228   :  { %2609 = vmatprep.subr.bf16.mxu1 %v2608_v58  ;;  %v2612_v6 = vpack.c.bf16 %v1344_v4, %v1342_v3  ;;  %v811_v58 = vld [vmem:[#allocation6 + $0xbf0] sm:$0xff] }
 0x229   :  { %v2546_v59 = vpack.c.bf16 %v811_v58, %v805_v45  ;;  %v1350_v56 = vld [vmem:[#allocation9 + $0x248] sm:$0xff]  ;;  %v1357_v45 = vld [vmem:[#allocation9 + $0x280] sm:$0xff] }
 0x22a   :  { %2483 = vmatpush1.bf16.msra.mxu0 %v2482_v9  ;;  %v2516_v9 = vpack.c.bf16 %v728_v60, %v722_v5  ;;  %v1341_v60 = vld [vmem:[#allocation9 + $0x200] sm:$0xff]  ;;  %v1719_v53 = vld [vmem:[%s3454_s7 + $0xb8] sm:$0xff] }
 0x22b   :  { %2485 = vmatprep.subr.bf16.mxu0 %v2484_v10  ;;  %2611 = vmatpush1.bf16.msra.mxu1 %v2610_v63  ;;  %v721_v10 = vld [vmem:[#allocation6 + $0x920] sm:$0xff]  ;;  %v818_v63 = vrot.slane %v3297_v62, %v3255_v15  ;;  %v1718_v52 = vld [vmem:[%s3454_s7 + $0xb0] sm:$0xff] }
 0x22c   :  { %2613 = vmatprep.subr.bf16.mxu1 %v2612_v6  ;;  %v2518_v18 = vpack.c.bf16 %v727_v11, %v721_v10  ;;  %v1348_v10 = vld [vmem:[#allocation9 + $0x238] sm:$0xff]  ;;  %v2752_v58 = vpack.c.bf16 %v1719_v53, %v1718_v52  ;;  %v1382_v52 = vld [vmem:[#allocation9 + $0x348] sm:$0xff] }
 0x22d   :  { %1194 = vmatmul.mubr.f32.vlgmr.msra.gmra.mrb[4].mxu0 %v3268_v37  ;;  %v2498_v37 = vpack.c.bf16 %v667_v36, %v661_v35  ;;  %v763_v35 = vld [vmem:[#allocation6 + $0xa70] sm:$0xff]  ;;  %v770_v36 = vld [vmem:[#allocation6 + $0xaa8] sm:$0xff]  ;;  %v1384_v53 = vld [vmem:[#allocation9 + $0x358] sm:$0xff] }
 0x22e   :  { %2487 = vmatpush1.bf16.msra.mxu0 %v2486_v19  ;;  %1264 = vmatprep.mubr.f32.mxu0 %v3280_v27  ;;  %v673_v27 = vld [vmem:[#allocation6 + $0x7a0] sm:$0xff]  ;;  %v2520_v19 = vpack.c.bf16 %v740_v13, %v734_v12 }
 0x22f   :  { %2489 = vmatprep.subr.bf16.mxu0 %v2488_v20  ;;  %v2502_v44 = vpack.c.bf16 %v679_v41, %v673_v27  ;;  %v733_v20 = vld [vmem:[#allocation6 + $0x980] sm:$0xff]  ;;  %v775_v27 = vld [vmem:[#allocation6 + $0xad0] sm:$0xff]  ;;  %v782_v41 = vld [vmem:[#allocation6 + $0xb08] sm:$0xff] }
 0x230   :  { %v2522_v24 = vpack.c.bf16 %v739_v21, %v733_v20  ;;  %v1347_v20 = vld [vmem:[#allocation9 + $0x230] sm:$0xff] }
 0x232   :  { %2491 = vmatpush1.bf16.msra.mxu0 %v2490_v26  ;;  %v2524_v26 = vpack.c.bf16 %v752_v23, %v746_v22  ;;  %v1352_v22 = vld [vmem:[#allocation9 + $0x258] sm:$0xff]  ;;  %v1349_v23 = vld [vmem:[#allocation9 + $0x240] sm:$0xff] }
 0x233   :  { %2493 = vmatprep.subr.bf16.mxu0 %v2492_v28  ;;  %v745_v28 = vld [vmem:[#allocation6 + $0x9e0] sm:$0xff] }
 0x234   :  { %v2526_v31 = vpack.c.bf16 %v751_v32, %v745_v28  ;;  %v1713_v28 = vld [vmem:[%s3454_s7 + $0x88] sm:$0xff]  ;;  %v1696_v32 = vld [vmem:[%s3454_s7] sm:$0xff] }
 0x236   :  { %2495 = vmatpush1.bf16.msra.mxu0 %v2494_v33  ;;  %v2528_v33 = vpack.c.bf16 %v764_v30, %v758_v29 }
 0x237   :  { %2497 = vmatprep.subr.bf16.mxu0 %v2496_v34  ;;  %v757_v34 = vld [vmem:[#allocation6 + $0xa40] sm:$0xff] }
 0x238   :  { %v2530_v39 = vpack.c.bf16 %v763_v35, %v757_v34  ;;  %v1715_v34 = vld [vmem:[%s3454_s7 + $0x98] sm:$0xff]  ;;  %v2620_v35 = vpack.c.bf16 %v1352_v22, %v1350_v56  ;;  %v1365_v22 = vld [vmem:[#allocation9 + $0x2c0] sm:$0xff] }
 0x23a   :  { %2499 = vmatpush1.bf16.msra.mxu0 %v2498_v37  ;;  %v2532_v37 = vpack.c.bf16 %v776_v38, %v770_v36 }
 0x23b   :  { %2501 = vmatprep.subr.bf16.mxu0 %v2500_v40  ;;  %v769_v40 = vld [vmem:[#allocation6 + $0xaa0] sm:$0xff] }
 0x23c   :  { %v2534_v43 = vpack.c.bf16 %v775_v27, %v769_v40  ;;  %v1716_v40 = vld [vmem:[%s3454_s7 + $0xa0] sm:$0xff]  ;;  %v1354_v27 = vld [vmem:[#allocation9 + $0x268] sm:$0xff] }
 0x23e   :  { %2503 = vmatpush1.bf16.msra.mxu0 %v2502_v44  ;;  %v2536_v44 = vpack.c.bf16 %v788_v42, %v782_v41  ;;  %v1356_v41 = vld [vmem:[#allocation9 + $0x278] sm:$0xff] }
 0x23f   :  { %2505 = vmatprep.subr.bf16.mxu0 %v2504_v46  ;;  %v781_v46 = vld [vmem:[#allocation6 + $0xb00] sm:$0xff] }
 0x240   :  { %v2538_v50 = vpack.c.bf16 %v787_v47, %v781_v46  ;;  %v1717_v42 = vld [vmem:[%s3454_s7 + $0xa8] sm:$0xff] }
 0x241   :  { %v1353_v46 = vld [vmem:[#allocation9 + $0x260] sm:$0xff]  ;;  %v2748_v47 = vpack.c.bf16 %v1717_v42, %v1716_v40  ;;  %v1374_v40 = vld [vmem:[#allocation9 + $0x308] sm:$0xff] }
 0x242   :  { %2507 = vmatpush1.bf16.msra.mxu0 %v2506_v51  ;;  %v2540_v51 = vpack.c.bf16 %v800_v49, %v794_v48  ;;  %v1700_v48 = vld [vmem:[%s3454_s7 + $0x20] sm:$0xff]  ;;  %v1701_v49 = vld [vmem:[%s3454_s7 + $0x28] sm:$0xff] }
 0x243   :  { %2509 = vmatprep.subr.bf16.mxu0 %v2508_v54  ;;  %v806_v54 = vld [vmem:[#allocation6 + $0xbc8] sm:$0xff] }
 0x244   :  { %v2544_v57 = vpack.c.bf16 %v812_v16, %v806_v54  ;;  %v1358_v54 = vld [vmem:[#allocation9 + $0x288] sm:$0xff]  ;;  %v1360_v16 = vld [vmem:[#allocation9 + $0x298] sm:$0xff] }
 0x246   :  { %2511 = vmatpush1.bf16.msra.mxu0 %v2510_v0  ;;  %v822_v0 = vrot.slane %v3297_v62, %v3260_v17 }
 0x247   :  { %2513 = vmatprep.subr.bf16.mxu0 %v2512_v1 }
 0x24a   :  { %2515 = vmatpush1.bf16.msra.mxu0 %v2514_v7 }
 0x24b   :  { %2517 = vmatprep.subr.bf16.mxu0 %v2516_v9  ;;  %v1346_v9 = vld [vmem:[#allocation9 + $0x228] sm:$0xff] }
 0x24e   :  { %2519 = vmatpush1.bf16.msra.mxu0 %v2518_v18  ;;  %v2616_v18 = vpack.c.bf16 %v1348_v10, %v1346_v9  ;;  %v1704_v9 = vld [vmem:[%s3454_s7 + $0x40] sm:$0xff]  ;;  %v1705_v10 = vld [vmem:[%s3454_s7 + $0x48] sm:$0xff] }
 0x24f   :  { %2521 = vmatprep.subr.bf16.mxu0 %v2520_v19  ;;  %v1345_v19 = vld [vmem:[#allocation9 + $0x220] sm:$0xff] }
 0x250   :  { %v2618_v29 = vpack.c.bf16 %v1347_v20, %v1345_v19  ;;  %v1366_v19 = vld [vmem:[#allocation9 + $0x2c8] sm:$0xff]  ;;  %v1368_v20 = vld [vmem:[#allocation9 + $0x2d8] sm:$0xff] }
 0x252   :  { %2523 = vmatpush1.bf16.msra.mxu0 %v2522_v24  ;;  %v1351_v24 = vld [vmem:[#allocation9 + $0x250] sm:$0xff] }
 0x253   :  { %2525 = vmatprep.subr.bf16.mxu0 %v2524_v26  ;;  %v1712_v26 = vld [vmem:[%s3454_s7 + $0x80] sm:$0xff] }
 0x254   :  { %v2740_v30 = vpack.c.bf16 %v1713_v28, %v1712_v26  ;;  %v1707_v26 = vld [vmem:[%s3454_s7 + $0x58] sm:$0xff]  ;;  %v2636_v28 = vpack.c.bf16 %v1368_v20, %v1366_v19 }
 0x256   :  { %2527 = vmatpush1.bf16.msra.mxu0 %v2526_v31  ;;  %v1697_v31 = vld [vmem:[%s3454_s7 + $0x8] sm:$0xff] }
 0x257   :  { %2529 = vmatprep.subr.bf16.mxu0 %v2528_v33  ;;  %v1714_v33 = vld [vmem:[%s3454_s7 + $0x90] sm:$0xff]  ;;  %v2742_v36 = vpack.c.bf16 %v1697_v31, %v1696_v32  ;;  %v1367_v32 = vld [vmem:[#allocation9 + $0x2d0] sm:$0xff] }
 0x258   :  { %v2744_v38 = vpack.c.bf16 %v1715_v34, %v1714_v33  ;;  %v1370_v31 = vld [vmem:[#allocation9 + $0x2e8] sm:$0xff]  ;;  %v1372_v33 = vld [vmem:[#allocation9 + $0x2f8] sm:$0xff] }
 0x25a   :  { %2531 = vmatpush1.bf16.msra.mxu0 %v2530_v39  ;;  %v1698_v39 = vld [vmem:[%s3454_s7 + $0x10] sm:$0xff] }
 0x25b   :  { %2533 = vmatprep.subr.bf16.mxu0 %v2532_v37  ;;  %v1699_v37 = vld [vmem:[%s3454_s7 + $0x18] sm:$0xff] }
 0x25e   :  { %2535 = vmatpush1.bf16.msra.mxu0 %v2534_v43  ;;  %v2746_v43 = vpack.c.bf16 %v1699_v37, %v1698_v39  ;;  %v1369_v39 = vld [vmem:[#allocation9 + $0x2e0] sm:$0xff]  ;;  %v1371_v37 = vld [vmem:[#allocation9 + $0x2f0] sm:$0xff] }
 0x25f   :  { %2537 = vmatprep.subr.bf16.mxu0 %v2536_v44  ;;  %v2622_v44 = vpack.c.bf16 %v1351_v24, %v1349_v23  ;;  %v1706_v24 = vld [vmem:[%s3454_s7 + $0x50] sm:$0xff] }
 0x260   :  { %v2762_v34 = vpack.c.bf16 %v1707_v26, %v1706_v24  ;;  %v826_v26 = vrot.slane %v3297_v62, %v256_v25 }
 0x262   :  { %2539 = vmatpush1.bf16.msra.mxu0 %v2538_v50  ;;  %v2624_v50 = vpack.c.bf16 %v1356_v41, %v1354_v27  ;;  %v1376_v27 = vld [vmem:[#allocation9 + $0x318] sm:$0xff]  ;;  %v2642_v41 = vpack.c.bf16 %v1371_v37, %v1369_v39  ;;  %v1410_v39 = vld [vmem:[#allocation9 + $0x428] sm:$0xff] }
 0x263   :  { %2541 = vmatprep.subr.bf16.mxu0 %v2540_v51  ;;  %v1355_v51 = vld [vmem:[#allocation9 + $0x270] sm:$0xff]  ;;  %v2644_v42 = vpack.c.bf16 %v1376_v27, %v1374_v40  ;;  %v1412_v37 = vld [vmem:[#allocation9 + $0x438] sm:$0xff] }
 0x264   :  { %v2680_v25 = vpack.c.bf16 %v1412_v37, %v1410_v39  ;;  %v1447_v39 = vld [vmem:[#allocation9 + $0x550] sm:$0xff]  ;;  %v1450_v37 = vld [vmem:[#allocation9 + $0x568] sm:$0xff] }
 0x266   :  { %2543 = vmatpush1.bf16.msra.mxu0 %v2542_v55  ;;  %v2750_v55 = vpack.c.bf16 %v1701_v49, %v1700_v48 }
 0x267   :  { %2545 = vmatprep.subr.bf16.mxu0 %v2544_v57  ;;  %v2626_v57 = vpack.c.bf16 %v1355_v51, %v1353_v46  ;;  %v1378_v46 = vld [vmem:[#allocation9 + $0x328] sm:$0xff]  ;;  %v1379_v51 = vld [vmem:[#allocation9 + $0x330] sm:$0xff] }
 0x26a   :  { %2547 = vmatpush1.bf16.msra.mxu0 %v2546_v59  ;;  %v1702_v59 = vld [vmem:[%s3454_s7 + $0x30] sm:$0xff] }
 0x26b   :  { %2741 = vmatprep.subr.bf16.mxu0 %v2740_v30  ;;  %v1725_v30 = vld [vmem:[%s3454_s7 + $0xe8] sm:$0xff] }
 0x26d   :  { %1265 = vmatmul.mubr.f32.vlgmr.msra.gmra.mrb[4].mxu0 %v3289_v61  ;;  %v1343_v61 = vld [vmem:[#allocation9 + $0x210] sm:$0xff] }
 0x26e   :  { %v2614_v12 = vpack.c.bf16 %v1343_v61, %v1341_v60  ;;  %2743 = vmatpush3.bf16.msra.mxu0 %v2742_v36 }
 0x26f   :  { %2745 = vmatprep.subr.bf16.mxu0 %v2744_v38  ;;  %v2640_v38 = vpack.c.bf16 %v1372_v33, %v1370_v31  ;;  %v1408_v31 = vld [vmem:[#allocation9 + $0x418] sm:$0xff] }
 0x272   :  { %2747 = vmatpush3.bf16.msra.mxu0 %v2746_v43  ;;  %v1373_v43 = vld [vmem:[#allocation9 + $0x300] sm:$0xff] }
 0x273   :  { %2749 = vmatprep.subr.bf16.mxu0 %v2748_v47  ;;  %v1380_v47 = vld [vmem:[#allocation9 + $0x338] sm:$0xff] }
 0x274   :  { %v2648_v49 = vpack.c.bf16 %v1380_v47, %v1378_v46  ;;  %v1413_v47 = vld [vmem:[#allocation9 + $0x440] sm:$0xff] }
 0x276   :  { %2751 = vmatpush3.bf16.msra.mxu0 %v2750_v55  ;;  %v1381_v55 = vld [vmem:[#allocation9 + $0x340] sm:$0xff] }
 0x277   :  { %2753 = vmatprep.subr.bf16.mxu0 %v2752_v58  ;;  %v1388_v58 = vld [vmem:[#allocation9 + $0x378] sm:$0xff] }
 0x2c0   :  { %v982_v1 = vpop.f32.mrb[2].mxu0  ;;  %v3306_v2 = vpop.f32.mrb[2].mxu1 }
 0x2c1   :  { %v2787_v3 = vadd.f32 %v982_v1, %v818_v63  ;;  %v984_v4 = vpop.f32.mrb[3].mxu0  ;;  %v1126_v5 = vpop.f32.mrb[3].mxu1  ;;  %v1703_v63 = vld [vmem:[%s3454_s7 + $0x38] sm:$0xff]  ;;  %v1720_v1 = vld [vmem:[%s3454_s7 + $0xc0] sm:$0xff] }
 0x2c2   :  { %v2788_v6 = vadd.f32 %v984_v4, %v822_v0  ;;  %v2790_v7 = vadd.f32 %v1126_v5, %v830_v8  ;;  %v2628_v0 = vpack.c.bf16 %v1360_v16, %v1358_v54  ;;  %v1359_v8 = vld [vmem:[#allocation9 + $0x290] sm:$0xff]  ;;  %v1362_v4 = vld [vmem:[#allocation9 + $0x2a8] sm:$0xff]  ;;  %v1364_v5 = vld [vmem:[#allocation9 + $0x2b8] sm:$0xff]  ;;  %v2754_v60 = vpack.c.bf16 %v1703_v63, %v1702_v59 }
 0x2c3   :  { %v1271_v13 = vmax.f32 %v2787_v3, 0.0  ;;  %v1721_v3 = vld [vmem:[%s3454_s7 + $0xc8] sm:$0xff]  ;;  %v2630_v61 = vpack.c.bf16 %v1359_v8, %v1357_v45  ;;  %v2652_v16 = vpack.c.bf16 %v1384_v53, %v1382_v52  ;;  %v1386_v45 = vld [vmem:[#allocation9 + $0x368] sm:$0xff]  ;;  %v1387_v8 = vld [vmem:[#allocation9 + $0x370] sm:$0xff] }
 0x2c4   :  { %v1272_v11 = vmax.f32 %v2788_v6, 0.0  ;;  %v1274_v21 = vmax.f32 %v2790_v7, 0.0  ;;  %v1361_v6 = vld [vmem:[#allocation9 + $0x2a0] sm:$0xff]  ;;  %v2756_v7 = vpack.c.bf16 %v1721_v3, %v1720_v1  ;;  %2755 = vmatpush3.bf16.msra.mxu0 %v2754_v60  ;;  %v2656_v63 = vpack.c.bf16 %v1388_v58, %v1386_v45  ;;  %v1390_v1 = vld [vmem:[#allocation9 + $0x388] sm:$0xff]  ;;  %v1392_v3 = vld [vmem:[#allocation9 + $0x398] sm:$0xff] }
 0x2c5   :  { %v1389_v60 = vld [vmem:[#allocation9 + $0x380] sm:$0xff] }
 0x2c6   :  { %1545 = vmatprep.mubr.f32.mxu1 %v1272_v11  ;;  %v2632_v11 = vpack.c.bf16 %v1364_v5, %v1362_v4  ;;  %2757 = vmatprep.subr.bf16.mxu0 %v2756_v7  ;;  %v2660_v5 = vpack.c.bf16 %v1392_v3, %v1390_v1  ;;  %v1396_v7 = vld [vmem:[#allocation9 + $0x3b8] sm:$0xff]  ;;  %v1417_v53 = vld [vmem:[#allocation9 + $0x460] sm:$0xff] }
 0x2c7   :  { %1546 = vmatmul.mubr.f32.vlgmr.msra.gmra.mrb[4].mxu1 %v1271_v13  ;;  %v1722_v13 = vld [vmem:[%s3454_s7 + $0xd0] sm:$0xff] }
 0x2c8   :  { %2615 = vmatpush1.bf16.msra.mxu1 %v2614_v12  ;;  %1616 = vmatprep.mubr.f32.mxu1 %v1274_v21  ;;  %v1363_v12 = vld [vmem:[#allocation9 + $0x2b0] sm:$0xff]  ;;  %v2758_v21 = vpack.c.bf16 %v1705_v10, %v1704_v9  ;;  %v1421_v58 = vld [vmem:[#allocation9 + $0x480] sm:$0xff] }
 0x2c9   :  { %2617 = vmatprep.subr.bf16.mxu1 %v2616_v18  ;;  %v1723_v18 = vld [vmem:[%s3454_s7 + $0xd8] sm:$0xff]  ;;  %v2634_v56 = vpack.c.bf16 %v1363_v12, %v1361_v6  ;;  %v1425_v3 = vld [vmem:[#allocation9 + $0x4a0] sm:$0xff] }
 0x2ca   :  { %v2760_v23 = vpack.c.bf16 %v1723_v18, %v1722_v13  ;;  %2759 = vmatpush3.bf16.msra.mxu0 %v2758_v21  ;;  %v1394_v6 = vld [vmem:[#allocation9 + $0x3a8] sm:$0xff]  ;;  %v1395_v12 = vld [vmem:[#allocation9 + $0x3b0] sm:$0xff]  ;;  %v1400_v18 = vld [vmem:[#allocation9 + $0x3d8] sm:$0xff] }
 0x2cb   :  { %v2664_v10 = vpack.c.bf16 %v1396_v7, %v1394_v6  ;;  %v1398_v13 = vld [vmem:[#allocation9 + $0x3c8] sm:$0xff]  ;;  %v1397_v21 = vld [vmem:[#allocation9 + $0x3c0] sm:$0xff] }
 0x2cc   :  { %2619 = vmatpush1.bf16.msra.mxu1 %v2618_v29  ;;  %v1724_v29 = vld [vmem:[%s3454_s7 + $0xe0] sm:$0xff]  ;;  %2761 = vmatprep.subr.bf16.mxu0 %v2760_v23  ;;  %v2668_v20 = vpack.c.bf16 %v1400_v18, %v1398_v13  ;;  %v1429_v7 = vld [vmem:[#allocation9 + $0x4c0] sm:$0xff] }
 0x2cd   :  { %2621 = vmatprep.subr.bf16.mxu1 %v2620_v35  ;;  %v2638_v35 = vpack.c.bf16 %v1367_v32, %v1365_v22  ;;  %v2764_v36 = vpack.c.bf16 %v1725_v30, %v1724_v29  ;;  %v1402_v22 = vld [vmem:[#allocation9 + $0x3e8] sm:$0xff]  ;;  %v1404_v23 = vld [vmem:[#allocation9 + $0x3f8] sm:$0xff]  ;;  %v1401_v32 = vld [vmem:[#allocation9 + $0x3e0] sm:$0xff] }
 0x2ce   :  { %2763 = vmatpush3.bf16.msra.mxu0 %v2762_v34  ;;  %v1403_v29 = vld [vmem:[#allocation9 + $0x3f0] sm:$0xff]  ;;  %v1406_v30 = vld [vmem:[#allocation9 + $0x408] sm:$0xff]  ;;  %v2789_v34 = vadd.f32 %v3306_v2, %v826_v26  ;;  %v1433_v18 = vld [vmem:[#allocation9 + $0x4e0] sm:$0xff] }
 0x2cf   :  { %2765 = vmatprep.subr.bf16.mxu0 %v2764_v36  ;;  %v2674_v33 = vpack.c.bf16 %v1403_v29, %v1401_v32  ;;  %v1405_v36 = vld [vmem:[#allocation9 + $0x400] sm:$0xff]  ;;  %v1442_v26 = vld [vmem:[#allocation9 + $0x528] sm:$0xff] }
 0x2d0   :  { %2623 = vmatpush1.bf16.msra.mxu1 %v2622_v44  ;;  %v1375_v44 = vld [vmem:[#allocation9 + $0x310] sm:$0xff]  ;;  %v1273_v27 = vmax.f32 %v2789_v34, 0.0  ;;  %v1448_v34 = vld [vmem:[#allocation9 + $0x558] sm:$0xff] }
 0x2d1   :  { %2625 = vmatprep.subr.bf16.mxu1 %v2624_v50  ;;  %v2646_v48 = vpack.c.bf16 %v1375_v44, %v1373_v43  ;;  %v1377_v50 = vld [vmem:[#allocation9 + $0x320] sm:$0xff]  ;;  %v1414_v43 = vld [vmem:[#allocation9 + $0x448] sm:$0xff]  ;;  %v1416_v44 = vld [vmem:[#allocation9 + $0x458] sm:$0xff] }
 0x2d2   :  { %v2650_v54 = vpack.c.bf16 %v1379_v51, %v1377_v50  ;;  %v2684_v2 = vpack.c.bf16 %v1416_v44, %v1414_v43  ;;  %v1420_v50 = vld [vmem:[#allocation9 + $0x478] sm:$0xff]  ;;  %v1454_v43 = vld [vmem:[#allocation9 + $0x588] sm:$0xff] }
 0x2d3   :  { %v1456_v44 = vld [vmem:[#allocation9 + $0x598] sm:$0xff] }
 0x2d4   :  { %2627 = vmatpush1.bf16.msra.mxu1 %v2626_v57  ;;  %v1383_v57 = vld [vmem:[#allocation9 + $0x350] sm:$0xff] }
 0x2d5   :  { %2629 = vmatprep.subr.bf16.mxu1 %v2628_v0  ;;  %v2654_v59 = vpack.c.bf16 %v1383_v57, %v1381_v55  ;;  %v1385_v0 = vld [vmem:[#allocation9 + $0x360] sm:$0xff]  ;;  %v1424_v55 = vld [vmem:[#allocation9 + $0x498] sm:$0xff] }
 0x2d6   :  { %v2658_v4 = vpack.c.bf16 %v1387_v8, %v1385_v0  ;;  %v1428_v0 = vld [vmem:[#allocation9 + $0x4b8] sm:$0xff] }
 0x2d8   :  { %2631 = vmatpush1.bf16.msra.mxu1 %v2630_v61  ;;  %v1391_v61 = vld [vmem:[#allocation9 + $0x390] sm:$0xff] }
 0x2d9   :  { %2633 = vmatprep.subr.bf16.mxu1 %v2632_v11  ;;  %v2662_v9 = vpack.c.bf16 %v1391_v61, %v1389_v60  ;;  %v1393_v11 = vld [vmem:[#allocation9 + $0x3a0] sm:$0xff]  ;;  %v1432_v60 = vld [vmem:[#allocation9 + $0x4d8] sm:$0xff] }
 0x2da   :  { %v2666_v19 = vpack.c.bf16 %v1395_v12, %v1393_v11  ;;  %v1436_v11 = vld [vmem:[#allocation9 + $0x4f8] sm:$0xff] }
 0x2dc   :  { %2635 = vmatpush1.bf16.msra.mxu1 %v2634_v56  ;;  %v1399_v56 = vld [vmem:[#allocation9 + $0x3d0] sm:$0xff] }
 0x2dd   :  { %2637 = vmatprep.subr.bf16.mxu1 %v2636_v28  ;;  %v2670_v24 = vpack.c.bf16 %v1399_v56, %v1397_v21  ;;  %v2672_v28 = vpack.c.bf16 %v1404_v23, %v1402_v22  ;;  %v1440_v21 = vld [vmem:[#allocation9 + $0x518] sm:$0xff]  ;;  %v1437_v23 = vld [vmem:[#allocation9 + $0x500] sm:$0xff] }
 0x2e0   :  { %2639 = vmatpush1.bf16.msra.mxu1 %v2638_v35  ;;  %v2676_v35 = vpack.c.bf16 %v1408_v31, %v1406_v30  ;;  %v1441_v30 = vld [vmem:[#allocation9 + $0x520] sm:$0xff]  ;;  %v1443_v31 = vld [vmem:[#allocation9 + $0x530] sm:$0xff] }
 0x2e1   :  { %2641 = vmatprep.subr.bf16.mxu1 %v2640_v38  ;;  %v1407_v38 = vld [vmem:[#allocation9 + $0x410] sm:$0xff] }
 0x2e2   :  { %v2678_v40 = vpack.c.bf16 %v1407_v38, %v1405_v36  ;;  %v1445_v38 = vld [vmem:[#allocation9 + $0x540] sm:$0xff] }
 0x2e4   :  { %2643 = vmatpush1.bf16.msra.mxu1 %v2642_v41  ;;  %v1409_v41 = vld [vmem:[#allocation9 + $0x420] sm:$0xff] }
 0x2e5   :  { %2645 = vmatprep.subr.bf16.mxu1 %v2644_v42  ;;  %v1411_v42 = vld [vmem:[#allocation9 + $0x430] sm:$0xff] }
 0x2e6   :  { %v2682_v46 = vpack.c.bf16 %v1411_v42, %v1409_v41  ;;  %v1449_v41 = vld [vmem:[#allocation9 + $0x560] sm:$0xff]  ;;  %v1451_v42 = vld [vmem:[#allocation9 + $0x570] sm:$0xff] }
 0x2e8   :  { %2647 = vmatpush1.bf16.msra.mxu1 %v2646_v48  ;;  %v1415_v48 = vld [vmem:[#allocation9 + $0x450] sm:$0xff] }
 0x2e9   :  { %2649 = vmatprep.subr.bf16.mxu1 %v2648_v49  ;;  %v1418_v49 = vld [vmem:[#allocation9 + $0x468] sm:$0xff]  ;;  %v2686_v51 = vpack.c.bf16 %v1415_v48, %v1413_v47  ;;  %v1453_v47 = vld [vmem:[#allocation9 + $0x580] sm:$0xff]  ;;  %v1455_v48 = vld [vmem:[#allocation9 + $0x590] sm:$0xff] }
 0x2ea   :  { %v2688_v52 = vpack.c.bf16 %v1420_v50, %v1418_v49  ;;  %v1458_v49 = vld [vmem:[#allocation9 + $0x5a8] sm:$0xff]  ;;  %v1460_v50 = vld [vmem:[#allocation9 + $0x5b8] sm:$0xff] }
 0x2ec   :  { %2651 = vmatpush1.bf16.msra.mxu1 %v2650_v54  ;;  %v1419_v54 = vld [vmem:[#allocation9 + $0x470] sm:$0xff] }
 0x2ed   :  { %2653 = vmatprep.subr.bf16.mxu1 %v2652_v16  ;;  %v1422_v16 = vld [vmem:[#allocation9 + $0x488] sm:$0xff]  ;;  %v2690_v57 = vpack.c.bf16 %v1419_v54, %v1417_v53  ;;  %v1457_v53 = vld [vmem:[#allocation9 + $0x5a0] sm:$0xff]  ;;  %v1459_v54 = vld [vmem:[#allocation9 + $0x5b0] sm:$0xff] }
 0x2ee   :  { %v2692_v45 = vpack.c.bf16 %v1424_v55, %v1422_v16  ;;  %v1462_v16 = vld [vmem:[#allocation9 + $0x5c8] sm:$0xff]  ;;  %v1464_v55 = vld [vmem:[#allocation9 + $0x5d8] sm:$0xff] }
 0x2f0   :  { %2655 = vmatpush1.bf16.msra.mxu1 %v2654_v59  ;;  %v1423_v59 = vld [vmem:[#allocation9 + $0x490] sm:$0xff] }
 0x2f1   :  { %2657 = vmatprep.subr.bf16.mxu1 %v2656_v63  ;;  %v1426_v63 = vld [vmem:[#allocation9 + $0x4a8] sm:$0xff]  ;;  %v2694_v8 = vpack.c.bf16 %v1423_v59, %v1421_v58  ;;  %v833_v58 = vsub.s32 4, %v3252_v14  ;;  %v1461_v59 = vld [vmem:[#allocation9 + $0x5c0] sm:$0xff] }
 0x2f2   :  { %v2696_v1 = vpack.c.bf16 %v1428_v0, %v1426_v63  ;;  %v1463_v63 = vld [vmem:[#allocation9 + $0x5d0] sm:$0xff]  ;;  %v837_v0 = vsub.s32 5, %v3252_v14 }
 0x2f4   :  { %2659 = vmatpush1.bf16.msra.mxu1 %v2658_v4  ;;  %v1427_v4 = vld [vmem:[#allocation9 + $0x4b0] sm:$0xff] }
 0x2f5   :  { %2661 = vmatprep.subr.bf16.mxu1 %v2660_v5  ;;  %v1430_v5 = vld [vmem:[#allocation9 + $0x4c8] sm:$0xff]  ;;  %v2698_v61 = vpack.c.bf16 %v1427_v4, %v1425_v3  ;;  %v2734_v3 = vpack.c.bf16 %v1463_v63, %v1461_v59  ;;  %v834_v4 = vrot.slane %v3297_v62, %v833_v58 }
 0x2f6   :  { %v2700_v6 = vpack.c.bf16 %v1432_v60, %v1430_v5  ;;  %v1465_v60 = vld [vmem:[#allocation9 + $0x5e0] sm:$0xff] }
 0x2f8   :  { %2663 = vmatpush1.bf16.msra.mxu1 %v2662_v9  ;;  %v1431_v9 = vld [vmem:[#allocation9 + $0x4d0] sm:$0xff] }
 0x2f9   :  { %2665 = vmatprep.subr.bf16.mxu1 %v2664_v10  ;;  %v1434_v10 = vld [vmem:[#allocation9 + $0x4e8] sm:$0xff]  ;;  %v2702_v12 = vpack.c.bf16 %v1431_v9, %v1429_v7 }
 0x2fa   :  { %v2704_v13 = vpack.c.bf16 %v1436_v11, %v1434_v10 }
 0x2fc   :  { %2667 = vmatpush1.bf16.msra.mxu1 %v2666_v19  ;;  %v1435_v19 = vld [vmem:[#allocation9 + $0x4f0] sm:$0xff] }
 0x2fd   :  { %2669 = vmatprep.subr.bf16.mxu1 %v2668_v20  ;;  %v1438_v20 = vld [vmem:[#allocation9 + $0x508] sm:$0xff]  ;;  %v2706_v56 = vpack.c.bf16 %v1435_v19, %v1433_v18  ;;  %v1708_v18 = vld [vmem:[%s3454_s7 + $0x60] sm:$0xff] }
 0x2fe   :  { %v2708_v22 = vpack.c.bf16 %v1440_v21, %v1438_v20  ;;  %v1726_v20 = vld [vmem:[%s3454_s7 + $0xf0] sm:$0xff]  ;;  %v1727_v21 = vld [vmem:[%s3454_s7 + $0xf8] sm:$0xff] }
 0x300   :  { %2671 = vmatpush1.bf16.msra.mxu1 %v2670_v24  ;;  %v1439_v24 = vld [vmem:[#allocation9 + $0x510] sm:$0xff] }
 0x301   :  { %2673 = vmatprep.subr.bf16.mxu1 %v2672_v28  ;;  %v1444_v28 = vld [vmem:[#allocation9 + $0x538] sm:$0xff]  ;;  %v2710_v32 = vpack.c.bf16 %v1439_v24, %v1437_v23  ;;  %v1711_v23 = vld [vmem:[%s3454_s7 + $0x78] sm:$0xff] }
 0x302   :  { %v2712_v29 = vpack.c.bf16 %v1444_v28, %v1442_v26  ;;  %v3048_v26 = vmov 0.0|0.0   ;;  %v1469_v28 = vld [vmem:[#allocation10] sm:$0x3] }
 0x304   :  { %2675 = vmatpush1.bf16.msra.mxu1 %v2674_v33  ;;  %v1446_v33 = vld [vmem:[#allocation9 + $0x548] sm:$0xff] }
 0x305   :  { %2677 = vmatprep.subr.bf16.mxu1 %v2676_v35  ;;  %v2714_v35 = vpack.c.bf16 %v1443_v31, %v1441_v30  ;;  %v2716_v36 = vpack.c.bf16 %v1448_v34, %v1446_v33  ;;  %v1805_v34 = vld [vmem:[%s3456_s9] sm:$0xff] }
 0x307   :  { %1617 = vmatmul.mubr.f32.vlgmr.msra.gmra.mrb[4].mxu1 %v1273_v27  ;;  %v2718_v27 = vpack.c.bf16 %v1447_v39, %v1445_v38 }
 0x308   :  { %2679 = vmatpush1.bf16.msra.mxu1 %v2678_v40  ;;  %v1452_v40 = vld [vmem:[#allocation9 + $0x578] sm:$0xff] }
 0x309   :  { %2681 = vmatprep.subr.bf16.mxu1 %v2680_v25  ;;  %v2720_v25 = vpack.c.bf16 %v1452_v40, %v1450_v37 }
 0x30c   :  { %2683 = vmatpush1.bf16.msra.mxu1 %v2682_v46  ;;  %v2722_v46 = vpack.c.bf16 %v1451_v42, %v1449_v41  ;;  %v1811_v42 = vld [vmem:[%s3456_s9 + $0x30] sm:$0xff] }
 0x30d   :  { %2685 = vmatprep.subr.bf16.mxu1 %v2684_v2  ;;  %v2724_v2 = vpack.c.bf16 %v1456_v44, %v1454_v43  ;;  %v1812_v43 = vld [vmem:[%s3456_s9 + $0x38] sm:$0xff] }
 0x30e   :  { %v2782_v44 = vpack.c.bf16 %v1812_v43, %v1811_v42 }
 0x310   :  { %2687 = vmatpush1.bf16.msra.mxu1 %v2686_v51  ;;  %v2726_v51 = vpack.c.bf16 %v1455_v48, %v1453_v47  ;;  %v1894_v47 = vld [vmem:[%s3458_s11] sm:$0xff]  ;;  %v1895_v48 = vld [vmem:[%s3458_s11 + $0x8] sm:$0xff] }
 0x311   :  { %2689 = vmatprep.subr.bf16.mxu1 %v2688_v52  ;;  %v2728_v52 = vpack.c.bf16 %v1460_v50, %v1458_v49  ;;  %v1994_v49 = vld [vmem:[#allocation12] ss:$0 sm:$0xff] }
 0x314   :  { %2691 = vmatpush1.bf16.msra.mxu1 %v2690_v57  ;;  %v2730_v57 = vpack.c.bf16 %v1459_v54, %v1457_v53  ;;  %v1995_v54 = vld [vmem:[#allocation13] ss:$0 sm:$0xff] }
 0x315   :  { %2693 = vmatprep.subr.bf16.mxu1 %v2692_v45  ;;  %v2732_v45 = vpack.c.bf16 %v1464_v55, %v1462_v16 }
 0x318   :  { %2695 = vmatpush1.bf16.msra.mxu1 %v2694_v8  ;;  %v1466_v8 = vld [vmem:[#allocation9 + $0x5e8] sm:$0xff] }
 0x319   :  { %2697 = vmatprep.subr.bf16.mxu1 %v2696_v1  ;;  %v1468_v1 = vld [vmem:[#allocation9 + $0x5f8] sm:$0xff] }
 0x31a   :  { %v2736_v5 = vpack.c.bf16 %v1468_v1, %v1466_v8 }
 0x31c   :  { %2699 = vmatpush1.bf16.msra.mxu1 %v2698_v61  ;;  %v1467_v61 = vld [vmem:[#allocation9 + $0x5f0] sm:$0xff] }
 0x31d   :  { %2701 = vmatprep.subr.bf16.mxu1 %v2700_v6  ;;  %v838_v6 = vrot.slane %v3297_v62, %v837_v0  ;;  %v2738_v9 = vpack.c.bf16 %v1467_v61, %v1465_v60  ;;  %v1709_v62 = vld [vmem:[%s3454_s7 + $0x68] sm:$0xff] }
 0x31e   :  { %v2766_v19 = vpack.c.bf16 %v1709_v62, %v1708_v18 }
 0x320   :  { %2703 = vmatpush1.bf16.msra.mxu1 %v2702_v12  ;;  %2767 = vmatpush3.bf16.msra.mxu0 %v2766_v19 }
 0x321   :  { %2705 = vmatprep.subr.bf16.mxu1 %v2704_v13 }
 0x324   :  { %2707 = vmatpush1.bf16.msra.mxu1 %v2706_v56  ;;  %v2768_v56 = vpack.c.bf16 %v1727_v21, %v1726_v20 }
 0x325   :  { %2709 = vmatprep.subr.bf16.mxu1 %v2708_v22  ;;  %v1710_v22 = vld [vmem:[%s3454_s7 + $0x70] sm:$0xff] }
 0x326   :  { %v2770_v24 = vpack.c.bf16 %v1711_v23, %v1710_v22  ;;  %2769 = vmatprep.subr.bf16.mxu0 %v2768_v56 }
 0x328   :  { %2711 = vmatpush1.bf16.msra.mxu1 %v2710_v32  ;;  %2771 = vmatpush3.bf16.msra.mxu0 %v2770_v24  ;;  %v1474_v32 = vrot.slane %v1469_v28, %v3255_v15  ;;  %v1807_v15 = vld [vmem:[%s3456_s9 + $0x10] sm:$0xff] }
 0x329   :  { %2713 = vmatprep.subr.bf16.mxu1 %v2712_v29  ;;  %2772 = vmatprep.subr.bf16.mxu0 %v3048_v26  ;;  %v1478_v29 = vrot.slane %v1469_v28, %v3260_v17  ;;  %v1808_v17 = vld [vmem:[%s3456_s9 + $0x18] sm:$0xff] }
 0x32a   :  { %v2776_v40 = vpack.c.bf16 %v1808_v17, %v1807_v15 }
 0x32c   :  { %2715 = vmatpush1.bf16.msra.mxu1 %v2714_v35  ;;  %v1806_v35 = vld [vmem:[%s3456_s9 + $0x8] sm:$0xff] }
 0x32d   :  { %2717 = vmatprep.subr.bf16.mxu1 %v2716_v36  ;;  %v2773_v39 = vpack.c.bf16 %v1806_v35, %v1805_v34 }
 0x330   :  { %2719 = vmatpush1.bf16.msra.mxu1 %v2718_v27  ;;  %v1809_v27 = vld [vmem:[%s3456_s9 + $0x20] sm:$0xff] }
 0x331   :  { %2721 = vmatprep.subr.bf16.mxu1 %v2720_v25  ;;  %v1810_v25 = vld [vmem:[%s3456_s9 + $0x28] sm:$0xff] }
 0x332   :  { %v2779_v41 = vpack.c.bf16 %v1810_v25, %v1809_v27 }
 0x334   :  { %2723 = vmatpush1.bf16.msra.mxu1 %v2722_v46  ;;  %v3050_v46 = vmov 0.0  }
 0x335   :  { %2725 = vmatprep.subr.bf16.mxu1 %v2724_v2 }
 0x338   :  { %2727 = vmatpush1.bf16.msra.mxu1 %v2726_v51 }
 0x339   :  { %2729 = vmatprep.subr.bf16.mxu1 %v2728_v52  ;;  %v2785_v52 = vpack.c.bf16 %v1895_v48, %v1894_v47 }
 0x33c   :  { %2731 = vmatpush1.bf16.msra.mxu1 %v2730_v57 }
 0x33d   :  { %2733 = vmatprep.subr.bf16.mxu1 %v2732_v45  ;;  %v1997_v45 = vld [vmem:[#allocation15] ss:$0 sm:$0xff] }
 0x340   :  { %v1266_v7 = vpop.f32.mrb[4].mxu0  ;;  %2735 = vmatpush1.bf16.msra.mxu1 %v2734_v3 }
 0x341   :  { %v2791_v10 = vadd.f32 %v1266_v7, %v834_v4  ;;  %v1268_v11 = vpop.f32.mrb[5].mxu0  ;;  %2737 = vmatprep.subr.bf16.mxu1 %v2736_v5 }
 0x342   :  { %v2792_v12 = vadd.f32 %v1268_v11, %v838_v6 }
 0x343   :  { %v1275_v13 = vmax.f32 %v2791_v10, 0.0 }
 0x344   :  { %v1276_v14 = vmax.f32 %v2792_v12, 0.0  ;;  %2739 = vmatpush1.bf16.msra.mxu1 %v2738_v9 }
 0x346   :  { %1687 = vmatprep.mubr.f32.mxu1 %v1276_v14 }
 0x347   :  { %1688 = vmatmul.mubr.f32.vlgmr.msra.gmra.mrb[4].mxu1 %v1275_v13 }
 0x41a   :  { %v1689_v30 = vpop.f32.mrb[4].mxu1 }
 0x41b   :  { %v2793_v31 = vadd.f32 %v1689_v30, %v1474_v32  ;;  %v1691_v33 = vpop.f32.mrb[5].mxu1 }
 0x41c   :  { %v2794_v36 = vadd.f32 %v1691_v33, %v1478_v29 }
 0x41d   :  { %v1694_v37 = vmax.f32 %v2793_v31, 0.0 }
 0x41e   :  { %v1695_v38 = vmax.f32 %v2794_v36, 0.0 }
 0x420   :  { %1799 = vmatprep.mubr.f32.mxu0 %v1695_v38 }
 0x421   :  { %1800 = vmatmul.mubr.f32.vlgmr.msra.gmra.mrb[6].mxu0 %v1694_v37 }
 0x422   :  { %2774 = vmatpush3.bf16.msra.mxu0 %v2773_v39  ;;  %2062 = vmatprep.mubr.msk.f32.mxu0 %vm3049_vm4, %v3050_v46 }
 0x423   :  { %2775 = vmatprep.subr.bf16.mxu0 %v3048_v26 }
 0x426   :  { %2777 = vmatpush3.bf16.msra.mxu0 %v2776_v40 }
 0x427   :  { %2778 = vmatprep.subr.bf16.mxu0 %v3048_v26 }
 0x42a   :  { %2780 = vmatpush3.bf16.msra.mxu0 %v2779_v41 }
 0x42b   :  { %2781 = vmatprep.subr.bf16.mxu0 %v3048_v26 }
 0x42e   :  { %2783 = vmatpush3.bf16.msra.mxu0 %v2782_v44 }
 0x42f   :  { %2784 = vmatprep.subr.bf16.mxu0 %v3048_v26 }
 0x4f4   :  { %v2031_v2 = vpop.f32.mrb[6].mxu0 }
 0x4f5   :  { %v2032_v50 = vpop.f32.mrb[7].mxu0 }
 0x4f6   :  { %v2033_v51 = vadd.f32 %v2032_v50, %v2031_v2 }
 0x4f8   :  { %v1802_v53 = vadd.f32 %v2033_v51, %v1994_v49 }
 0x4fa   :  { %2063 = vmatmul.mubr.msk.f32.vlgmr.msra.gmra.mrb[8].mxu0 %vm1820_vm5, %v1802_v53 }
 0x4fb   :  { %2786 = vmatpush3.bf16.msra.mxu0 %v2785_v52  ;;  %2069 = vmatprep.mubr.msk.f32.mxu0 %vm3049_vm4, %v3050_v46 }
 0x5cd   :  { %v1890_v16 = vpop.f32.mrb[8].mxu0 }
 0x5ce   :  { %v1891_v55 = vadd.f32 %v1995_v54, %v1890_v16  ;;  %v2064_v57 = vpop.f32.mrb[9].mxu0 }
 0x5d0   :  { %2070 = vmatmul.mubr.msk.f32.vlgmr.msra.gmra.mrb[10].mxu0 %vm1903_vm6, %v1891_v55 }
 0x6a3   :  { %v1973_v58 = vpop.f32.mrb[10].mxu0 }
 0x6a4   :  { %v1974_v59 = vadd.f32 %v1997_v45, %v1973_v58  ;;  %v2071_v63 = vpop.f32.mrb[11].mxu0 }
 0x6a6   :  { %1978 = vst.msk [vmem:[%s3460_s13] sm:$0xff] %vm1977_vm7, %v1974_v59 }
 0x6a7   :  { %1983 = vsyncpa [#allocation3], 1 }
 0x6a8   :  { %1984 = vsyncpa [#allocation5], 1 }
 0x6a9   :  { %1985 = vsyncpa [#allocation8], 1 }
 0x6aa   :  { %1986 = vsyncpa [#allocation11], 1 }
 0x6ab   :  { %1987 = vsyncpa [#allocation14], 1 }

</bundles_post_ra>
